<compile_context>
chip_gen: v7x
topology: tpu7x:2x2x1
jax: 0.10.0
libtpu: 0.0.40
codegen_flags: <defaults>
</compile_context>

<pallas_src>
import jax
import jax.numpy as jnp
from jax.experimental import pallas as pl
from jax.experimental.pallas import tpu as pltpu


# ----------------------------------------------------------------------------
# Pallas kernel
# ----------------------------------------------------------------------------
def gfb2_kernel(row_lo_ref, row_hi_ref,            # scalar-prefetch (SMEM, int32 [H])
                ir_ref, vis_ref, gw_ref, fr_ref,   # [C,T], [C,T], [Hg,C,W], [1,TH]
                b1_ref, wir_ref, wvis_ref, wg2_ref, b2_ref,
                out_ref):
    C, T = ir_ref.shape
    _, _, W = gw_ref.shape
    TH = T // W                       # image rows per tile (static)
    i = pl.program_id(1)
    r0 = i * TH                       # first absolute image row of this tile

    # conv_out over ir and vis slices of the (never materialized) concat.
    acc = jnp.dot(wir_ref[...], ir_ref[...], preferred_element_type=jnp.float32)
    acc = acc + jnp.dot(wvis_ref[...], vis_ref[...],
                        preferred_element_type=jnp.float32)

    # Global-info branch, height pass: for each image row of the tile, blend
    # two rows of the width-resized low-res tensor (2-tap bilinear,
    # align_corners=True), add folded-BN bias, ReLU.  Rows are assembled along
    # lanes (th*W + w == local pixel index) so the result is directly the
    # [C, T] operand of the third 1x1-conv dot -- no relayout, no scratch.
    b1 = b1_ref[...]                                    # [C, 1]
    rows = []
    for th in range(TH):                                # static unroll (TH small)
        r = r0 + th
        lo = row_lo_ref[r]
        hi = row_hi_ref[r]
        fr = fr_ref[:, th:th + 1]                       # [1, 1] blend weight
        glo = gw_ref[lo]                                # [C, W]
        ghi = gw_ref[hi]                                # [C, W]
        row = glo + fr * (ghi - glo)                    # (1-fr)*glo + fr*ghi
        rows.append(jnp.maximum(row + b1, 0.0))         # bias + ReLU
    g_tile = rows[0] if TH == 1 else jnp.concatenate(rows, axis=-1)   # [C, T]

    acc = acc + jnp.dot(wg2_ref[...], g_tile.astype(wg2_ref.dtype),
                        preferred_element_type=jnp.float32)
    out_ref[...] = jnp.maximum(acc + b2_ref[...], 0.0).astype(out_ref.dtype)


# ----------------------------------------------------------------------------
# Glue (plain JAX, outside the kernel)
# ----------------------------------------------------------------------------
def bilinear_matrix(out_size, in_size):
    """Rows of align_corners=True bilinear interpolation weights, [out, in]."""
    o = jnp.arange(out_size, dtype=jnp.float32)
    if out_size > 1:
        src = o * (in_size - 1) / (out_size - 1)
    else:
        src = jnp.zeros((out_size,), jnp.float32)
    lo = jnp.clip(jnp.floor(src).astype(jnp.int32), 0, in_size - 1)
    hi = jnp.clip(lo + 1, 0, in_size - 1)
    frac = src - lo.astype(jnp.float32)
    rows = jnp.arange(out_size)
    m = jnp.zeros((out_size, in_size), jnp.float32)
    m = m.at[rows, lo].add(1.0 - frac)
    m = m.at[rows, hi].add(frac)
    return m


def bilinear_rows(out_size, in_size):
    """Per-output-row (lo, hi, frac) for align_corners=True bilinear resize."""
    o = jnp.arange(out_size, dtype=jnp.float32)
    if out_size > 1:
        src = o * (in_size - 1) / (out_size - 1)
    else:
        src = jnp.zeros((out_size,), jnp.float32)
    lo = jnp.clip(jnp.floor(src), 0, in_size - 1).astype(jnp.int32)
    hi = jnp.clip(lo + 1, 0, in_size - 1).astype(jnp.int32)
    fr = (src - lo.astype(jnp.float32)).astype(jnp.float32)
    return lo, hi, fr


def fold_bn(conv_w, conv_b, gamma, beta, mean, var, eps=1e-5):
    """Fold inference-mode BatchNorm into a 1x1-conv weight [Cout, Cin] / bias."""
    scale = gamma / jnp.sqrt(var + eps)
    w = conv_w * scale[:, None]
    b = (conv_b - mean) * scale + beta
    return w, b


def _pick_tile_rows(H, W, max_tile_pixels=8192):
    """Largest row count TH dividing H with TH*W <= cap and a legal lane block."""
    best = None
    for th in range(1, H + 1):
        if H % th:
            continue
        t = th * W
        legal = (t % 128 == 0) or (th == H)   # BlockSpec last-dim constraint
        if legal and t <= max_tile_pixels:
            best = th
    if best is None:
        best = H                               # whole image per tile (always legal)
    return best


# ----------------------------------------------------------------------------
# Wrapper
# ----------------------------------------------------------------------------
def gfb2_forward(ir, vis, global_info, params, *, compute_dtype=jnp.float32,
                 out_dtype=jnp.float32, tile_rows=None, max_tile_pixels=8192):
    N, C, H, W = ir.shape
    _, Cg, Hg, Wg = global_info.shape
    HW = H * W

    TH = tile_rows if tile_rows is not None else _pick_tile_rows(H, W, max_tile_pixels)
    assert H % TH == 0, (H, TH)
    n_tiles = H // TH
    T = TH * W

    # Fold BN into the 1x1 convs and split the concat conv per source.
    w1, b1 = fold_bn(params["conv1_w"].reshape(C, Cg), params["conv1_b"],
                     params["bn1_g"], params["bn1_b"],
                     params["bn1_mean"], params["bn1_var"])
    Co = params["conv2_w"].shape[0]
    w2, b2 = fold_bn(params["conv2_w"].reshape(Co, 3 * C), params["conv2_b"],
                     params["bn2_g"], params["bn2_b"],
                     params["bn2_mean"], params["bn2_var"])

    cd = compute_dtype
    # NCHW flattening only (free reshapes; no transposes of the big tensors).
    ir_f = ir.reshape(N, C, HW).astype(cd)
    vis_f = vis.reshape(N, C, HW).astype(cd)

    # Global branch pre-pass on the LOW-RES grid (tiny tensor, plain JAX):
    # channel projection (conv1 w/ BN folded) + width resize -> [N, Hg, C, W].
    # Valid because projection and resize are both linear and ReLU comes later;
    # the folded bias b1 is applied at full resolution inside the kernel.
    aw = bilinear_matrix(W, Wg)                                       # [W, Wg]
    gp = jnp.einsum("ck,nkhv->nchv", w1, global_info.astype(jnp.float32))
    gw = jnp.einsum("nchv,wv->nhcw", gp, aw)                          # [N,Hg,C,W] f32

    row_lo, row_hi, row_fr = bilinear_rows(H, Hg)                     # [H] each
    fr3 = row_fr.reshape(n_tiles, 1, TH)                              # per-tile block

    b1col = b1.reshape(C, 1).astype(jnp.float32)
    wir = w2[:, :C].astype(cd)                                        # [Co, C]
    wvis = w2[:, C:2 * C].astype(cd)                                  # [Co, C]
    wg2 = w2[:, 2 * C:].astype(cd)                                    # [Co, C]
    b2col = b2.reshape(Co, 1).astype(jnp.float32)

    # Explicit VMEM budget (double-buffered blocks + live intermediates).
    cd_sz = jnp.dtype(cd).itemsize
    out_sz = jnp.dtype(out_dtype).itemsize
    est = (2 * 2 * C * T * cd_sz          # ir + vis blocks (double-buffered)
           + 2 * Co * T * out_sz          # out block (double-buffered)
           + 2 * Hg * C * W * 4           # gw block
           + 2 * (Co + C) * T * 4         # acc / g_tile intermediates
           + (3 * Co * C + Co + C + n_tiles * TH) * 4)
    vmem_limit = int(min(64 * 1024 * 1024, max(32 * 1024 * 1024, 2 * est)))

    out_flat = pl.pallas_call(
        gfb2_kernel,
        out_shape=jax.ShapeDtypeStruct((N, Co, HW), out_dtype),
        grid_spec=pltpu.PrefetchScalarGridSpec(
            num_scalar_prefetch=2,                       # row_lo, row_hi (SMEM)
            grid=(N, n_tiles),
            in_specs=[
                pl.BlockSpec((None, C, T), lambda n, i, *_: (n, 0, i)),        # ir
                pl.BlockSpec((None, C, T), lambda n, i, *_: (n, 0, i)),        # vis
                pl.BlockSpec((None, Hg, C, W), lambda n, i, *_: (n, 0, 0, 0)), # gw
                pl.BlockSpec((None, 1, TH), lambda n, i, *_: (i, 0, 0)),       # frac
                pl.BlockSpec((C, 1), lambda n, i, *_: (0, 0)),                 # b1
                pl.BlockSpec((Co, C), lambda n, i, *_: (0, 0)),                # W2[:, ir]
                pl.BlockSpec((Co, C), lambda n, i, *_: (0, 0)),                # W2[:, vis]
                pl.BlockSpec((Co, C), lambda n, i, *_: (0, 0)),                # W2[:, gi]
                pl.BlockSpec((Co, 1), lambda n, i, *_: (0, 0)),                # b2
            ],
            out_specs=pl.BlockSpec((None, Co, T), lambda n, i, *_: (n, 0, i)),
        ),
        compiler_params=pltpu.CompilerParams(
            dimension_semantics=("parallel", "parallel"),
            vmem_limit_bytes=vmem_limit),
    )(row_lo, row_hi, ir_f, vis_f, gw, fr3, b1col, wir, wvis, wg2, b2col)

    return out_flat.reshape(N, Co, H, W)


# ----------------------------------------------------------------------------
# Pure-JAX reference in the original (unfolded) PyTorch op order.
# ----------------------------------------------------------------------------
def gfb2_reference(ir, vis, global_info, params):
    N, C, H, W = ir.shape
    _, Cg, Hg, Wg = global_info.shape
    Ah = bilinear_matrix(H, Hg)
    Aw = bilinear_matrix(W, Wg)
    gi_rs = jnp.einsum("hg,ncgv,wv->nchw", Ah, global_info, Aw)

    def conv_bn_relu(x, w, b, gamma, beta, mean, var, eps=1e-5):
        y = jnp.einsum("dk,nkhw->ndhw", w, x) + b[None, :, None, None]
        y = (y - mean[None, :, None, None]) / jnp.sqrt(var[None, :, None, None] + eps)
        y = y * gamma[None, :, None, None] + beta[None, :, None, None]
        return jnp.maximum(y, 0.0)

    g = conv_bn_relu(gi_rs, params["conv1_w"].reshape(C, Cg), params["conv1_b"],
                     params["bn1_g"], params["bn1_b"],
                     params["bn1_mean"], params["bn1_var"])
    Co = params["conv2_w"].shape[0]
    fus = jnp.concatenate([ir, vis, g], axis=1)
    return conv_bn_relu(fus, params["conv2_w"].reshape(Co, 3 * C), params["conv2_b"],
                        params["bn2_g"], params["bn2_b"],
                        params["bn2_mean"], params["bn2_var"])


if __name__ == "__main__":
    # Small shapes consistent with the module: ir/vis [N,C,H,W], global [N,Cg,Hg,Wg]
    N, C, Cg, Co = 2, 4, 6, 8
    H = W = 16
    Hg = Wg = 8

    key = jax.random.PRNGKey(0)
    ks = jax.random.split(key, 16)
    ir = jax.random.normal(ks[0], (N, C, H, W), jnp.float32)
    vis = jax.random.normal(ks[1], (N, C, H, W), jnp.float32)
    global_info = jax.random.normal(ks[2], (N, Cg, Hg, Wg), jnp.float32)

    params = {
        # conv_globalinfo: Conv2d(Cg -> C, 1x1) + BN(C)
        "conv1_w": 0.2 * jax.random.normal(ks[3], (C, Cg, 1, 1), jnp.float32),
        "conv1_b": 0.1 * jax.random.normal(ks[4], (C,), jnp.float32),
        "bn1_g": 1.0 + 0.1 * jax.random.normal(ks[5], (C,), jnp.float32),
        "bn1_b": 0.1 * jax.random.normal(ks[6], (C,), jnp.float32),
        "bn1_mean": 0.05 * jax.random.normal(ks[7], (C,), jnp.float32),
        "bn1_var": 1.0 + 0.1 * jnp.abs(jax.random.normal(ks[8], (C,), jnp.float32)),
        # conv_out: Conv2d(3C -> Co, 1x1) + BN(Co)
        "conv2_w": 0.2 * jax.random.normal(ks[9], (Co, 3 * C, 1, 1), jnp.float32),
        "conv2_b": 0.1 * jax.random.normal(ks[10], (Co,), jnp.float32),
        "bn2_g": 1.0 + 0.1 * jax.random.normal(ks[11], (Co,), jnp.float32),
        "bn2_b": 0.1 * jax.random.normal(ks[12], (Co,), jnp.float32),
        "bn2_mean": 0.05 * jax.random.normal(ks[13], (Co,), jnp.float32),
        "bn2_var": 1.0 + 0.1 * jnp.abs(jax.random.normal(ks[14], (Co,), jnp.float32)),
    }

    ref = gfb2_reference(ir, vis, global_info, params)

    # f32 path, default tiling (whole 16x16 image per tile).
    out = gfb2_forward(ir, vis, global_info, params)
    out = jax.block_until_ready(out)
    assert out.shape == (N, Co, H, W), out.shape
    assert jnp.allclose(out, ref, atol=1e-4, rtol=1e-4), "f32 mismatch vs reference"

    # f32 path, two row-tiles per sample (exercises dynamic row indexing, i>0).
    out2 = gfb2_forward(ir, vis, global_info, params, tile_rows=8)
    out2 = jax.block_until_ready(out2)
    assert jnp.allclose(out2, ref, atol=1e-4, rtol=1e-4), "tiled f32 mismatch"

    # bf16 activations/weights + bf16 output (HBM-bandwidth option), f32 accum.
    out_bf16 = gfb2_forward(ir, vis, global_info, params,
                            compute_dtype=jnp.bfloat16, out_dtype=jnp.bfloat16)
    out_bf16 = jax.block_until_ready(out_bf16)
    assert jnp.allclose(out_bf16.astype(jnp.float32), ref,
                        atol=1e-1, rtol=1e-1), "bf16 mismatch"

    print("KERNEL_OK")
</pallas_src>

<mosaic_0001>
module attributes {stable_mosaic.version = 11 : i64} {
  func.func @gfb2_kernel(%arg0: i32, %arg1: i32, %arg2: memref<16xi32, #tpu.memory_space<smem>>, %arg3: memref<16xi32, #tpu.memory_space<smem>>, %arg4: memref<1x4x256xf32, #tpu.memory_space<vmem>>, %arg5: memref<1x4x256xf32, #tpu.memory_space<vmem>>, %arg6: memref<1x8x4x16xf32, #tpu.memory_space<vmem>>, %arg7: memref<1x1x16xf32, #tpu.memory_space<vmem>>, %arg8: memref<4x1xf32, #tpu.memory_space<vmem>>, %arg9: memref<8x4xf32, #tpu.memory_space<vmem>>, %arg10: memref<8x4xf32, #tpu.memory_space<vmem>>, %arg11: memref<8x4xf32, #tpu.memory_space<vmem>>, %arg12: memref<8x1xf32, #tpu.memory_space<vmem>>, %arg13: memref<1x8x256xf32, #tpu.memory_space<vmem>>) attributes {dimension_semantics = [#tpu.dimension_semantics<parallel>, #tpu.dimension_semantics<parallel>], iteration_bounds = array<i64: 2, 1>, scalar_prefetch = 2 : i64, scratch_operands = 0 : i64, tpu.core_type = #tpu.core_type<tc>, window_params = [{transform_indices = @transform_0, window_bounds = array<i64: 1, 4, 256>}, {transform_indices = @transform_1, window_bounds = array<i64: 1, 4, 256>}, {transform_indices = @transform_2, window_bounds = array<i64: 1, 8, 4, 16>}, {transform_indices = @transform_3, window_bounds = array<i64: 1, 1, 16>}, {pipeline_mode = #tpu.pipeline_mode<synchronous>, transform_indices = @transform_4, window_bounds = array<i64: 4, 1>}, {pipeline_mode = #tpu.pipeline_mode<synchronous>, transform_indices = @transform_5, window_bounds = array<i64: 8, 4>}, {pipeline_mode = #tpu.pipeline_mode<synchronous>, transform_indices = @transform_6, window_bounds = array<i64: 8, 4>}, {pipeline_mode = #tpu.pipeline_mode<synchronous>, transform_indices = @transform_7, window_bounds = array<i64: 8, 4>}, {pipeline_mode = #tpu.pipeline_mode<synchronous>, transform_indices = @transform_8, window_bounds = array<i64: 8, 1>}, {transform_indices = @transform_9, window_bounds = array<i64: 1, 8, 256>}]} {
    %c16_i32 = arith.constant 16 : i32
    %0 = arith.muli %arg1, %c16_i32 : i32
    %c0 = arith.constant 0 : index
    %c0_0 = arith.constant 0 : index
    %1 = vector.load %arg9[%c0, %c0_0] : memref<8x4xf32, #tpu.memory_space<vmem>>, vector<8x4xf32>
    %c0_1 = arith.constant 0 : index
    %c0_2 = arith.constant 0 : index
    %c0_3 = arith.constant 0 : index
    %2 = vector.load %arg4[%c0_1, %c0_2, %c0_3] : memref<1x4x256xf32, #tpu.memory_space<vmem>>, vector<1x4x256xf32>
    %3 = vector.shape_cast %2 : vector<1x4x256xf32> to vector<4x256xf32>
    %cst = arith.constant dense<0.000000e+00> : vector<8x256xf32>
    %4 = tpu.matmul %1, %3, %cst {dimension_numbers = #tpu.dot_dimension_numbers<[1], [0], [0], [1], [0, 0, 1, 1], [], []>} : vector<8x4xf32>, vector<4x256xf32>, vector<8x256xf32> -> vector<8x256xf32>
    %c0_4 = arith.constant 0 : index
    %c0_5 = arith.constant 0 : index
    %5 = vector.load %arg10[%c0_4, %c0_5] : memref<8x4xf32, #tpu.memory_space<vmem>>, vector<8x4xf32>
    %c0_6 = arith.constant 0 : index
    %c0_7 = arith.constant 0 : index
    %c0_8 = arith.constant 0 : index
    %6 = vector.load %arg5[%c0_6, %c0_7, %c0_8] : memref<1x4x256xf32, #tpu.memory_space<vmem>>, vector<1x4x256xf32>
    %7 = vector.shape_cast %6 : vector<1x4x256xf32> to vector<4x256xf32>
    %cst_9 = arith.constant dense<0.000000e+00> : vector<8x256xf32>
    %8 = tpu.matmul %5, %7, %cst_9 {dimension_numbers = #tpu.dot_dimension_numbers<[1], [0], [0], [1], [0, 0, 1, 1], [], []>} : vector<8x4xf32>, vector<4x256xf32>, vector<8x256xf32> -> vector<8x256xf32>
    %9 = arith.addf %4, %8 : vector<8x256xf32>
    %c0_10 = arith.constant 0 : index
    %c0_11 = arith.constant 0 : index
    %10 = vector.load %arg8[%c0_10, %c0_11] : memref<4x1xf32, #tpu.memory_space<vmem>>, vector<4x1xf32>
    %c0_i32 = arith.constant 0 : i32
    %11 = arith.addi %0, %c0_i32 : i32
    %12 = arith.index_cast %11 : i32 to index
    %13 = memref.load %arg2[%12] : memref<16xi32, #tpu.memory_space<smem>>
    %14 = arith.index_cast %11 : i32 to index
    %15 = memref.load %arg3[%14] : memref<16xi32, #tpu.memory_space<smem>>
    %c0_12 = arith.constant 0 : index
    %c0_13 = arith.constant 0 : index
    %c0_14 = arith.constant 0 : index
    %16 = vector.load %arg7[%c0_12, %c0_13, %c0_14] : memref<1x1x16xf32, #tpu.memory_space<vmem>>, vector<1x1x1xf32>
    %17 = vector.shape_cast %16 : vector<1x1x1xf32> to vector<1x1xf32>
    %c0_15 = arith.constant 0 : index
    %18 = arith.index_cast %13 : i32 to index
    %c0_16 = arith.constant 0 : index
    %c0_17 = arith.constant 0 : index
    %19 = vector.load %arg6[%c0_15, %18, %c0_16, %c0_17] : memref<1x8x4x16xf32, #tpu.memory_space<vmem>>, vector<1x1x4x16xf32>
    %20 = vector.shape_cast %19 : vector<1x1x4x16xf32> to vector<4x16xf32>
    %c0_18 = arith.constant 0 : index
    %21 = arith.index_cast %15 : i32 to index
    %c0_19 = arith.constant 0 : index
    %c0_20 = arith.constant 0 : index
    %22 = vector.load %arg6[%c0_18, %21, %c0_19, %c0_20] : memref<1x8x4x16xf32, #tpu.memory_space<vmem>>, vector<1x1x4x16xf32>
    %23 = vector.shape_cast %22 : vector<1x1x4x16xf32> to vector<4x16xf32>
    %24 = arith.subf %23, %20 : vector<4x16xf32>
    %25 = vector.broadcast %17 : vector<1x1xf32> to vector<4x16xf32>
    %26 = arith.mulf %25, %24 : vector<4x16xf32>
    %27 = arith.addf %20, %26 : vector<4x16xf32>
    %28 = vector.broadcast %10 : vector<4x1xf32> to vector<4x16xf32>
    %29 = arith.addf %27, %28 : vector<4x16xf32>
    %cst_21 = arith.constant 0.000000e+00 : f32
    %30 = vector.broadcast %cst_21 : f32 to vector<4x16xf32>
    %31 = arith.maximumf %29, %30 : vector<4x16xf32>
    %c1_i32 = arith.constant 1 : i32
    %32 = arith.addi %0, %c1_i32 : i32
    %33 = arith.index_cast %32 : i32 to index
    %34 = memref.load %arg2[%33] : memref<16xi32, #tpu.memory_space<smem>>
    %35 = arith.index_cast %32 : i32 to index
    %36 = memref.load %arg3[%35] : memref<16xi32, #tpu.memory_space<smem>>
    %c0_22 = arith.constant 0 : index
    %c0_23 = arith.constant 0 : index
    %c1 = arith.constant 1 : index
    %37 = vector.load %arg7[%c0_22, %c0_23, %c1] : memref<1x1x16xf32, #tpu.memory_space<vmem>>, vector<1x1x1xf32>
    %38 = vector.shape_cast %37 : vector<1x1x1xf32> to vector<1x1xf32>
    %c0_24 = arith.constant 0 : index
    %39 = arith.index_cast %34 : i32 to index
    %c0_25 = arith.constant 0 : index
    %c0_26 = arith.constant 0 : index
    %40 = vector.load %arg6[%c0_24, %39, %c0_25, %c0_26] : memref<1x8x4x16xf32, #tpu.memory_space<vmem>>, vector<1x1x4x16xf32>
    %41 = vector.shape_cast %40 : vector<1x1x4x16xf32> to vector<4x16xf32>
    %c0_27 = arith.constant 0 : index
    %42 = arith.index_cast %36 : i32 to index
    %c0_28 = arith.constant 0 : index
    %c0_29 = arith.constant 0 : index
    %43 = vector.load %arg6[%c0_27, %42, %c0_28, %c0_29] : memref<1x8x4x16xf32, #tpu.memory_space<vmem>>, vector<1x1x4x16xf32>
    %44 = vector.shape_cast %43 : vector<1x1x4x16xf32> to vector<4x16xf32>
    %45 = arith.subf %44, %41 : vector<4x16xf32>
    %46 = vector.broadcast %38 : vector<1x1xf32> to vector<4x16xf32>
    %47 = arith.mulf %46, %45 : vector<4x16xf32>
    %48 = arith.addf %41, %47 : vector<4x16xf32>
    %49 = vector.broadcast %10 : vector<4x1xf32> to vector<4x16xf32>
    %50 = arith.addf %48, %49 : vector<4x16xf32>
    %cst_30 = arith.constant 0.000000e+00 : f32
    %51 = vector.broadcast %cst_30 : f32 to vector<4x16xf32>
    %52 = arith.maximumf %50, %51 : vector<4x16xf32>
    %c2_i32 = arith.constant 2 : i32
    %53 = arith.addi %0, %c2_i32 : i32
    %54 = arith.index_cast %53 : i32 to index
    %55 = memref.load %arg2[%54] : memref<16xi32, #tpu.memory_space<smem>>
    %56 = arith.index_cast %53 : i32 to index
    %57 = memref.load %arg3[%56] : memref<16xi32, #tpu.memory_space<smem>>
    %c0_31 = arith.constant 0 : index
    %c0_32 = arith.constant 0 : index
    %c2 = arith.constant 2 : index
    %58 = vector.load %arg7[%c0_31, %c0_32, %c2] : memref<1x1x16xf32, #tpu.memory_space<vmem>>, vector<1x1x1xf32>
    %59 = vector.shape_cast %58 : vector<1x1x1xf32> to vector<1x1xf32>
    %c0_33 = arith.constant 0 : index
    %60 = arith.index_cast %55 : i32 to index
    %c0_34 = arith.constant 0 : index
    %c0_35 = arith.constant 0 : index
    %61 = vector.load %arg6[%c0_33, %60, %c0_34, %c0_35] : memref<1x8x4x16xf32, #tpu.memory_space<vmem>>, vector<1x1x4x16xf32>
    %62 = vector.shape_cast %61 : vector<1x1x4x16xf32> to vector<4x16xf32>
    %c0_36 = arith.constant 0 : index
    %63 = arith.index_cast %57 : i32 to index
    %c0_37 = arith.constant 0 : index
    %c0_38 = arith.constant 0 : index
    %64 = vector.load %arg6[%c0_36, %63, %c0_37, %c0_38] : memref<1x8x4x16xf32, #tpu.memory_space<vmem>>, vector<1x1x4x16xf32>
    %65 = vector.shape_cast %64 : vector<1x1x4x16xf32> to vector<4x16xf32>
    %66 = arith.subf %65, %62 : vector<4x16xf32>
    %67 = vector.broadcast %59 : vector<1x1xf32> to vector<4x16xf32>
    %68 = arith.mulf %67, %66 : vector<4x16xf32>
    %69 = arith.addf %62, %68 : vector<4x16xf32>
    %70 = vector.broadcast %10 : vector<4x1xf32> to vector<4x16xf32>
    %71 = arith.addf %69, %70 : vector<4x16xf32>
    %cst_39 = arith.constant 0.000000e+00 : f32
    %72 = vector.broadcast %cst_39 : f32 to vector<4x16xf32>
    %73 = arith.maximumf %71, %72 : vector<4x16xf32>
    %c3_i32 = arith.constant 3 : i32
    %74 = arith.addi %0, %c3_i32 : i32
    %75 = arith.index_cast %74 : i32 to index
    %76 = memref.load %arg2[%75] : memref<16xi32, #tpu.memory_space<smem>>
    %77 = arith.index_cast %74 : i32 to index
    %78 = memref.load %arg3[%77] : memref<16xi32, #tpu.memory_space<smem>>
    %c0_40 = arith.constant 0 : index
    %c0_41 = arith.constant 0 : index
    %c3 = arith.constant 3 : index
    %79 = vector.load %arg7[%c0_40, %c0_41, %c3] : memref<1x1x16xf32, #tpu.memory_space<vmem>>, vector<1x1x1xf32>
    %80 = vector.shape_cast %79 : vector<1x1x1xf32> to vector<1x1xf32>
    %c0_42 = arith.constant 0 : index
    %81 = arith.index_cast %76 : i32 to index
    %c0_43 = arith.constant 0 : index
    %c0_44 = arith.constant 0 : index
    %82 = vector.load %arg6[%c0_42, %81, %c0_43, %c0_44] : memref<1x8x4x16xf32, #tpu.memory_space<vmem>>, vector<1x1x4x16xf32>
    %83 = vector.shape_cast %82 : vector<1x1x4x16xf32> to vector<4x16xf32>
    %c0_45 = arith.constant 0 : index
    %84 = arith.index_cast %78 : i32 to index
    %c0_46 = arith.constant 0 : index
    %c0_47 = arith.constant 0 : index
    %85 = vector.load %arg6[%c0_45, %84, %c0_46, %c0_47] : memref<1x8x4x16xf32, #tpu.memory_space<vmem>>, vector<1x1x4x16xf32>
    %86 = vector.shape_cast %85 : vector<1x1x4x16xf32> to vector<4x16xf32>
    %87 = arith.subf %86, %83 : vector<4x16xf32>
    %88 = vector.broadcast %80 : vector<1x1xf32> to vector<4x16xf32>
    %89 = arith.mulf %88, %87 : vector<4x16xf32>
    %90 = arith.addf %83, %89 : vector<4x16xf32>
    %91 = vector.broadcast %10 : vector<4x1xf32> to vector<4x16xf32>
    %92 = arith.addf %90, %91 : vector<4x16xf32>
    %cst_48 = arith.constant 0.000000e+00 : f32
    %93 = vector.broadcast %cst_48 : f32 to vector<4x16xf32>
    %94 = arith.maximumf %92, %93 : vector<4x16xf32>
    %c4_i32 = arith.constant 4 : i32
    %95 = arith.addi %0, %c4_i32 : i32
    %96 = arith.index_cast %95 : i32 to index
    %97 = memref.load %arg2[%96] : memref<16xi32, #tpu.memory_space<smem>>
    %98 = arith.index_cast %95 : i32 to index
    %99 = memref.load %arg3[%98] : memref<16xi32, #tpu.memory_space<smem>>
    %c0_49 = arith.constant 0 : index
    %c0_50 = arith.constant 0 : index
    %c4 = arith.constant 4 : index
    %100 = vector.load %arg7[%c0_49, %c0_50, %c4] : memref<1x1x16xf32, #tpu.memory_space<vmem>>, vector<1x1x1xf32>
    %101 = vector.shape_cast %100 : vector<1x1x1xf32> to vector<1x1xf32>
    %c0_51 = arith.constant 0 : index
    %102 = arith.index_cast %97 : i32 to index
    %c0_52 = arith.constant 0 : index
    %c0_53 = arith.constant 0 : index
    %103 = vector.load %arg6[%c0_51, %102, %c0_52, %c0_53] : memref<1x8x4x16xf32, #tpu.memory_space<vmem>>, vector<1x1x4x16xf32>
    %104 = vector.shape_cast %103 : vector<1x1x4x16xf32> to vector<4x16xf32>
    %c0_54 = arith.constant 0 : index
    %105 = arith.index_cast %99 : i32 to index
    %c0_55 = arith.constant 0 : index
    %c0_56 = arith.constant 0 : index
    %106 = vector.load %arg6[%c0_54, %105, %c0_55, %c0_56] : memref<1x8x4x16xf32, #tpu.memory_space<vmem>>, vector<1x1x4x16xf32>
    %107 = vector.shape_cast %106 : vector<1x1x4x16xf32> to vector<4x16xf32>
    %108 = arith.subf %107, %104 : vector<4x16xf32>
    %109 = vector.broadcast %101 : vector<1x1xf32> to vector<4x16xf32>
    %110 = arith.mulf %109, %108 : vector<4x16xf32>
    %111 = arith.addf %104, %110 : vector<4x16xf32>
    %112 = vector.broadcast %10 : vector<4x1xf32> to vector<4x16xf32>
    %113 = arith.addf %111, %112 : vector<4x16xf32>
    %cst_57 = arith.constant 0.000000e+00 : f32
    %114 = vector.broadcast %cst_57 : f32 to vector<4x16xf32>
    %115 = arith.maximumf %113, %114 : vector<4x16xf32>
    %c5_i32 = arith.constant 5 : i32
    %116 = arith.addi %0, %c5_i32 : i32
    %117 = arith.index_cast %116 : i32 to index
    %118 = memref.load %arg2[%117] : memref<16xi32, #tpu.memory_space<smem>>
    %119 = arith.index_cast %116 : i32 to index
    %120 = memref.load %arg3[%119] : memref<16xi32, #tpu.memory_space<smem>>
    %c0_58 = arith.constant 0 : index
    %c0_59 = arith.constant 0 : index
    %c5 = arith.constant 5 : index
    %121 = vector.load %arg7[%c0_58, %c0_59, %c5] : memref<1x1x16xf32, #tpu.memory_space<vmem>>, vector<1x1x1xf32>
    %122 = vector.shape_cast %121 : vector<1x1x1xf32> to vector<1x1xf32>
    %c0_60 = arith.constant 0 : index
    %123 = arith.index_cast %118 : i32 to index
    %c0_61 = arith.constant 0 : index
    %c0_62 = arith.constant 0 : index
    %124 = vector.load %arg6[%c0_60, %123, %c0_61, %c0_62] : memref<1x8x4x16xf32, #tpu.memory_space<vmem>>, vector<1x1x4x16xf32>
    %125 = vector.shape_cast %124 : vector<1x1x4x16xf32> to vector<4x16xf32>
    %c0_63 = arith.constant 0 : index
    %126 = arith.index_cast %120 : i32 to index
    %c0_64 = arith.constant 0 : index
    %c0_65 = arith.constant 0 : index
    %127 = vector.load %arg6[%c0_63, %126, %c0_64, %c0_65] : memref<1x8x4x16xf32, #tpu.memory_space<vmem>>, vector<1x1x4x16xf32>
    %128 = vector.shape_cast %127 : vector<1x1x4x16xf32> to vector<4x16xf32>
    %129 = arith.subf %128, %125 : vector<4x16xf32>
    %130 = vector.broadcast %122 : vector<1x1xf32> to vector<4x16xf32>
    %131 = arith.mulf %130, %129 : vector<4x16xf32>
    %132 = arith.addf %125, %131 : vector<4x16xf32>
    %133 = vector.broadcast %10 : vector<4x1xf32> to vector<4x16xf32>
    %134 = arith.addf %132, %133 : vector<4x16xf32>
    %cst_66 = arith.constant 0.000000e+00 : f32
    %135 = vector.broadcast %cst_66 : f32 to vector<4x16xf32>
    %136 = arith.maximumf %134, %135 : vector<4x16xf32>
    %c6_i32 = arith.constant 6 : i32
    %137 = arith.addi %0, %c6_i32 : i32
    %138 = arith.index_cast %137 : i32 to index
    %139 = memref.load %arg2[%138] : memref<16xi32, #tpu.memory_space<smem>>
    %140 = arith.index_cast %137 : i32 to index
    %141 = memref.load %arg3[%140] : memref<16xi32, #tpu.memory_space<smem>>
    %c0_67 = arith.constant 0 : index
    %c0_68 = arith.constant 0 : index
    %c6 = arith.constant 6 : index
    %142 = vector.load %arg7[%c0_67, %c0_68, %c6] : memref<1x1x16xf32, #tpu.memory_space<vmem>>, vector<1x1x1xf32>
    %143 = vector.shape_cast %142 : vector<1x1x1xf32> to vector<1x1xf32>
    %c0_69 = arith.constant 0 : index
    %144 = arith.index_cast %139 : i32 to index
    %c0_70 = arith.constant 0 : index
    %c0_71 = arith.constant 0 : index
    %145 = vector.load %arg6[%c0_69, %144, %c0_70, %c0_71] : memref<1x8x4x16xf32, #tpu.memory_space<vmem>>, vector<1x1x4x16xf32>
    %146 = vector.shape_cast %145 : vector<1x1x4x16xf32> to vector<4x16xf32>
    %c0_72 = arith.constant 0 : index
    %147 = arith.index_cast %141 : i32 to index
    %c0_73 = arith.constant 0 : index
    %c0_74 = arith.constant 0 : index
    %148 = vector.load %arg6[%c0_72, %147, %c0_73, %c0_74] : memref<1x8x4x16xf32, #tpu.memory_space<vmem>>, vector<1x1x4x16xf32>
    %149 = vector.shape_cast %148 : vector<1x1x4x16xf32> to vector<4x16xf32>
    %150 = arith.subf %149, %146 : vector<4x16xf32>
    %151 = vector.broadcast %143 : vector<1x1xf32> to vector<4x16xf32>
    %152 = arith.mulf %151, %150 : vector<4x16xf32>
    %153 = arith.addf %146, %152 : vector<4x16xf32>
    %154 = vector.broadcast %10 : vector<4x1xf32> to vector<4x16xf32>
    %155 = arith.addf %153, %154 : vector<4x16xf32>
    %cst_75 = arith.constant 0.000000e+00 : f32
    %156 = vector.broadcast %cst_75 : f32 to vector<4x16xf32>
    %157 = arith.maximumf %155, %156 : vector<4x16xf32>
    %c7_i32 = arith.constant 7 : i32
    %158 = arith.addi %0, %c7_i32 : i32
    %159 = arith.index_cast %158 : i32 to index
    %160 = memref.load %arg2[%159] : memref<16xi32, #tpu.memory_space<smem>>
    %161 = arith.index_cast %158 : i32 to index
    %162 = memref.load %arg3[%161] : memref<16xi32, #tpu.memory_space<smem>>
    %c0_76 = arith.constant 0 : index
    %c0_77 = arith.constant 0 : index
    %c7 = arith.constant 7 : index
    %163 = vector.load %arg7[%c0_76, %c0_77, %c7] : memref<1x1x16xf32, #tpu.memory_space<vmem>>, vector<1x1x1xf32>
    %164 = vector.shape_cast %163 : vector<1x1x1xf32> to vector<1x1xf32>
    %c0_78 = arith.constant 0 : index
    %165 = arith.index_cast %160 : i32 to index
    %c0_79 = arith.constant 0 : index
    %c0_80 = arith.constant 0 : index
    %166 = vector.load %arg6[%c0_78, %165, %c0_79, %c0_80] : memref<1x8x4x16xf32, #tpu.memory_space<vmem>>, vector<1x1x4x16xf32>
    %167 = vector.shape_cast %166 : vector<1x1x4x16xf32> to vector<4x16xf32>
    %c0_81 = arith.constant 0 : index
    %168 = arith.index_cast %162 : i32 to index
    %c0_82 = arith.constant 0 : index
    %c0_83 = arith.constant 0 : index
    %169 = vector.load %arg6[%c0_81, %168, %c0_82, %c0_83] : memref<1x8x4x16xf32, #tpu.memory_space<vmem>>, vector<1x1x4x16xf32>
    %170 = vector.shape_cast %169 : vector<1x1x4x16xf32> to vector<4x16xf32>
    %171 = arith.subf %170, %167 : vector<4x16xf32>
    %172 = vector.broadcast %164 : vector<1x1xf32> to vector<4x16xf32>
    %173 = arith.mulf %172, %171 : vector<4x16xf32>
    %174 = arith.addf %167, %173 : vector<4x16xf32>
    %175 = vector.broadcast %10 : vector<4x1xf32> to vector<4x16xf32>
    %176 = arith.addf %174, %175 : vector<4x16xf32>
    %cst_84 = arith.constant 0.000000e+00 : f32
    %177 = vector.broadcast %cst_84 : f32 to vector<4x16xf32>
    %178 = arith.maximumf %176, %177 : vector<4x16xf32>
    %c8_i32 = arith.constant 8 : i32
    %179 = arith.addi %0, %c8_i32 : i32
    %180 = arith.index_cast %179 : i32 to index
    %181 = memref.load %arg2[%180] : memref<16xi32, #tpu.memory_space<smem>>
    %182 = arith.index_cast %179 : i32 to index
    %183 = memref.load %arg3[%182] : memref<16xi32, #tpu.memory_space<smem>>
    %c0_85 = arith.constant 0 : index
    %c0_86 = arith.constant 0 : index
    %c8 = arith.constant 8 : index
    %184 = vector.load %arg7[%c0_85, %c0_86, %c8] : memref<1x1x16xf32, #tpu.memory_space<vmem>>, vector<1x1x1xf32>
    %185 = vector.shape_cast %184 : vector<1x1x1xf32> to vector<1x1xf32>
    %c0_87 = arith.constant 0 : index
    %186 = arith.index_cast %181 : i32 to index
    %c0_88 = arith.constant 0 : index
    %c0_89 = arith.constant 0 : index
    %187 = vector.load %arg6[%c0_87, %186, %c0_88, %c0_89] : memref<1x8x4x16xf32, #tpu.memory_space<vmem>>, vector<1x1x4x16xf32>
    %188 = vector.shape_cast %187 : vector<1x1x4x16xf32> to vector<4x16xf32>
    %c0_90 = arith.constant 0 : index
    %189 = arith.index_cast %183 : i32 to index
    %c0_91 = arith.constant 0 : index
    %c0_92 = arith.constant 0 : index
    %190 = vector.load %arg6[%c0_90, %189, %c0_91, %c0_92] : memref<1x8x4x16xf32, #tpu.memory_space<vmem>>, vector<1x1x4x16xf32>
    %191 = vector.shape_cast %190 : vector<1x1x4x16xf32> to vector<4x16xf32>
    %192 = arith.subf %191, %188 : vector<4x16xf32>
    %193 = vector.broadcast %185 : vector<1x1xf32> to vector<4x16xf32>
    %194 = arith.mulf %193, %192 : vector<4x16xf32>
    %195 = arith.addf %188, %194 : vector<4x16xf32>
    %196 = vector.broadcast %10 : vector<4x1xf32> to vector<4x16xf32>
    %197 = arith.addf %195, %196 : vector<4x16xf32>
    %cst_93 = arith.constant 0.000000e+00 : f32
    %198 = vector.broadcast %cst_93 : f32 to vector<4x16xf32>
    %199 = arith.maximumf %197, %198 : vector<4x16xf32>
    %c9_i32 = arith.constant 9 : i32
    %200 = arith.addi %0, %c9_i32 : i32
    %201 = arith.index_cast %200 : i32 to index
    %202 = memref.load %arg2[%201] : memref<16xi32, #tpu.memory_space<smem>>
    %203 = arith.index_cast %200 : i32 to index
    %204 = memref.load %arg3[%203] : memref<16xi32, #tpu.memory_space<smem>>
    %c0_94 = arith.constant 0 : index
    %c0_95 = arith.constant 0 : index
    %c9 = arith.constant 9 : index
    %205 = vector.load %arg7[%c0_94, %c0_95, %c9] : memref<1x1x16xf32, #tpu.memory_space<vmem>>, vector<1x1x1xf32>
    %206 = vector.shape_cast %205 : vector<1x1x1xf32> to vector<1x1xf32>
    %c0_96 = arith.constant 0 : index
    %207 = arith.index_cast %202 : i32 to index
    %c0_97 = arith.constant 0 : index
    %c0_98 = arith.constant 0 : index
    %208 = vector.load %arg6[%c0_96, %207, %c0_97, %c0_98] : memref<1x8x4x16xf32, #tpu.memory_space<vmem>>, vector<1x1x4x16xf32>
    %209 = vector.shape_cast %208 : vector<1x1x4x16xf32> to vector<4x16xf32>
    %c0_99 = arith.constant 0 : index
    %210 = arith.index_cast %204 : i32 to index
    %c0_100 = arith.constant 0 : index
    %c0_101 = arith.constant 0 : index
    %211 = vector.load %arg6[%c0_99, %210, %c0_100, %c0_101] : memref<1x8x4x16xf32, #tpu.memory_space<vmem>>, vector<1x1x4x16xf32>
    %212 = vector.shape_cast %211 : vector<1x1x4x16xf32> to vector<4x16xf32>
    %213 = arith.subf %212, %209 : vector<4x16xf32>
    %214 = vector.broadcast %206 : vector<1x1xf32> to vector<4x16xf32>
    %215 = arith.mulf %214, %213 : vector<4x16xf32>
    %216 = arith.addf %209, %215 : vector<4x16xf32>
    %217 = vector.broadcast %10 : vector<4x1xf32> to vector<4x16xf32>
    %218 = arith.addf %216, %217 : vector<4x16xf32>
    %cst_102 = arith.constant 0.000000e+00 : f32
    %219 = vector.broadcast %cst_102 : f32 to vector<4x16xf32>
    %220 = arith.maximumf %218, %219 : vector<4x16xf32>
    %c10_i32 = arith.constant 10 : i32
    %221 = arith.addi %0, %c10_i32 : i32
    %222 = arith.index_cast %221 : i32 to index
    %223 = memref.load %arg2[%222] : memref<16xi32, #tpu.memory_space<smem>>
    %224 = arith.index_cast %221 : i32 to index
    %225 = memref.load %arg3[%224] : memref<16xi32, #tpu.memory_space<smem>>
    %c0_103 = arith.constant 0 : index
    %c0_104 = arith.constant 0 : index
    %c10 = arith.constant 10 : index
    %226 = vector.load %arg7[%c0_103, %c0_104, %c10] : memref<1x1x16xf32, #tpu.memory_space<vmem>>, vector<1x1x1xf32>
    %227 = vector.shape_cast %226 : vector<1x1x1xf32> to vector<1x1xf32>
    %c0_105 = arith.constant 0 : index
    %228 = arith.index_cast %223 : i32 to index
    %c0_106 = arith.constant 0 : index
    %c0_107 = arith.constant 0 : index
    %229 = vector.load %arg6[%c0_105, %228, %c0_106, %c0_107] : memref<1x8x4x16xf32, #tpu.memory_space<vmem>>, vector<1x1x4x16xf32>
    %230 = vector.shape_cast %229 : vector<1x1x4x16xf32> to vector<4x16xf32>
    %c0_108 = arith.constant 0 : index
    %231 = arith.index_cast %225 : i32 to index
    %c0_109 = arith.constant 0 : index
    %c0_110 = arith.constant 0 : index
    %232 = vector.load %arg6[%c0_108, %231, %c0_109, %c0_110] : memref<1x8x4x16xf32, #tpu.memory_space<vmem>>, vector<1x1x4x16xf32>
    %233 = vector.shape_cast %232 : vector<1x1x4x16xf32> to vector<4x16xf32>
    %234 = arith.subf %233, %230 : vector<4x16xf32>
    %235 = vector.broadcast %227 : vector<1x1xf32> to vector<4x16xf32>
    %236 = arith.mulf %235, %234 : vector<4x16xf32>
    %237 = arith.addf %230, %236 : vector<4x16xf32>
    %238 = vector.broadcast %10 : vector<4x1xf32> to vector<4x16xf32>
    %239 = arith.addf %237, %238 : vector<4x16xf32>
    %cst_111 = arith.constant 0.000000e+00 : f32
    %240 = vector.broadcast %cst_111 : f32 to vector<4x16xf32>
    %241 = arith.maximumf %239, %240 : vector<4x16xf32>
    %c11_i32 = arith.constant 11 : i32
    %242 = arith.addi %0, %c11_i32 : i32
    %243 = arith.index_cast %242 : i32 to index
    %244 = memref.load %arg2[%243] : memref<16xi32, #tpu.memory_space<smem>>
    %245 = arith.index_cast %242 : i32 to index
    %246 = memref.load %arg3[%245] : memref<16xi32, #tpu.memory_space<smem>>
    %c0_112 = arith.constant 0 : index
    %c0_113 = arith.constant 0 : index
    %c11 = arith.constant 11 : index
    %247 = vector.load %arg7[%c0_112, %c0_113, %c11] : memref<1x1x16xf32, #tpu.memory_space<vmem>>, vector<1x1x1xf32>
    %248 = vector.shape_cast %247 : vector<1x1x1xf32> to vector<1x1xf32>
    %c0_114 = arith.constant 0 : index
    %249 = arith.index_cast %244 : i32 to index
    %c0_115 = arith.constant 0 : index
    %c0_116 = arith.constant 0 : index
    %250 = vector.load %arg6[%c0_114, %249, %c0_115, %c0_116] : memref<1x8x4x16xf32, #tpu.memory_space<vmem>>, vector<1x1x4x16xf32>
    %251 = vector.shape_cast %250 : vector<1x1x4x16xf32> to vector<4x16xf32>
    %c0_117 = arith.constant 0 : index
    %252 = arith.index_cast %246 : i32 to index
    %c0_118 = arith.constant 0 : index
    %c0_119 = arith.constant 0 : index
    %253 = vector.load %arg6[%c0_117, %252, %c0_118, %c0_119] : memref<1x8x4x16xf32, #tpu.memory_space<vmem>>, vector<1x1x4x16xf32>
    %254 = vector.shape_cast %253 : vector<1x1x4x16xf32> to vector<4x16xf32>
    %255 = arith.subf %254, %251 : vector<4x16xf32>
    %256 = vector.broadcast %248 : vector<1x1xf32> to vector<4x16xf32>
    %257 = arith.mulf %256, %255 : vector<4x16xf32>
    %258 = arith.addf %251, %257 : vector<4x16xf32>
    %259 = vector.broadcast %10 : vector<4x1xf32> to vector<4x16xf32>
    %260 = arith.addf %258, %259 : vector<4x16xf32>
    %cst_120 = arith.constant 0.000000e+00 : f32
    %261 = vector.broadcast %cst_120 : f32 to vector<4x16xf32>
    %262 = arith.maximumf %260, %261 : vector<4x16xf32>
    %c12_i32 = arith.constant 12 : i32
    %263 = arith.addi %0, %c12_i32 : i32
    %264 = arith.index_cast %263 : i32 to index
    %265 = memref.load %arg2[%264] : memref<16xi32, #tpu.memory_space<smem>>
    %266 = arith.index_cast %263 : i32 to index
    %267 = memref.load %arg3[%266] : memref<16xi32, #tpu.memory_space<smem>>
    %c0_121 = arith.constant 0 : index
    %c0_122 = arith.constant 0 : index
    %c12 = arith.constant 12 : index
    %268 = vector.load %arg7[%c0_121, %c0_122, %c12] : memref<1x1x16xf32, #tpu.memory_space<vmem>>, vector<1x1x1xf32>
    %269 = vector.shape_cast %268 : vector<1x1x1xf32> to vector<1x1xf32>
    %c0_123 = arith.constant 0 : index
    %270 = arith.index_cast %265 : i32 to index
    %c0_124 = arith.constant 0 : index
    %c0_125 = arith.constant 0 : index
    %271 = vector.load %arg6[%c0_123, %270, %c0_124, %c0_125] : memref<1x8x4x16xf32, #tpu.memory_space<vmem>>, vector<1x1x4x16xf32>
    %272 = vector.shape_cast %271 : vector<1x1x4x16xf32> to vector<4x16xf32>
    %c0_126 = arith.constant 0 : index
    %273 = arith.index_cast %267 : i32 to index
    %c0_127 = arith.constant 0 : index
    %c0_128 = arith.constant 0 : index
    %274 = vector.load %arg6[%c0_126, %273, %c0_127, %c0_128] : memref<1x8x4x16xf32, #tpu.memory_space<vmem>>, vector<1x1x4x16xf32>
    %275 = vector.shape_cast %274 : vector<1x1x4x16xf32> to vector<4x16xf32>
    %276 = arith.subf %275, %272 : vector<4x16xf32>
    %277 = vector.broadcast %269 : vector<1x1xf32> to vector<4x16xf32>
    %278 = arith.mulf %277, %276 : vector<4x16xf32>
    %279 = arith.addf %272, %278 : vector<4x16xf32>
    %280 = vector.broadcast %10 : vector<4x1xf32> to vector<4x16xf32>
    %281 = arith.addf %279, %280 : vector<4x16xf32>
    %cst_129 = arith.constant 0.000000e+00 : f32
    %282 = vector.broadcast %cst_129 : f32 to vector<4x16xf32>
    %283 = arith.maximumf %281, %282 : vector<4x16xf32>
    %c13_i32 = arith.constant 13 : i32
    %284 = arith.addi %0, %c13_i32 : i32
    %285 = arith.index_cast %284 : i32 to index
    %286 = memref.load %arg2[%285] : memref<16xi32, #tpu.memory_space<smem>>
    %287 = arith.index_cast %284 : i32 to index
    %288 = memref.load %arg3[%287] : memref<16xi32, #tpu.memory_space<smem>>
    %c0_130 = arith.constant 0 : index
    %c0_131 = arith.constant 0 : index
    %c13 = arith.constant 13 : index
    %289 = vector.load %arg7[%c0_130, %c0_131, %c13] : memref<1x1x16xf32, #tpu.memory_space<vmem>>, vector<1x1x1xf32>
    %290 = vector.shape_cast %289 : vector<1x1x1xf32> to vector<1x1xf32>
    %c0_132 = arith.constant 0 : index
    %291 = arith.index_cast %286 : i32 to index
    %c0_133 = arith.constant 0 : index
    %c0_134 = arith.constant 0 : index
    %292 = vector.load %arg6[%c0_132, %291, %c0_133, %c0_134] : memref<1x8x4x16xf32, #tpu.memory_space<vmem>>, vector<1x1x4x16xf32>
    %293 = vector.shape_cast %292 : vector<1x1x4x16xf32> to vector<4x16xf32>
    %c0_135 = arith.constant 0 : index
    %294 = arith.index_cast %288 : i32 to index
    %c0_136 = arith.constant 0 : index
    %c0_137 = arith.constant 0 : index
    %295 = vector.load %arg6[%c0_135, %294, %c0_136, %c0_137] : memref<1x8x4x16xf32, #tpu.memory_space<vmem>>, vector<1x1x4x16xf32>
    %296 = vector.shape_cast %295 : vector<1x1x4x16xf32> to vector<4x16xf32>
    %297 = arith.subf %296, %293 : vector<4x16xf32>
    %298 = vector.broadcast %290 : vector<1x1xf32> to vector<4x16xf32>
    %299 = arith.mulf %298, %297 : vector<4x16xf32>
    %300 = arith.addf %293, %299 : vector<4x16xf32>
    %301 = vector.broadcast %10 : vector<4x1xf32> to vector<4x16xf32>
    %302 = arith.addf %300, %301 : vector<4x16xf32>
    %cst_138 = arith.constant 0.000000e+00 : f32
    %303 = vector.broadcast %cst_138 : f32 to vector<4x16xf32>
    %304 = arith.maximumf %302, %303 : vector<4x16xf32>
    %c14_i32 = arith.constant 14 : i32
    %305 = arith.addi %0, %c14_i32 : i32
    %306 = arith.index_cast %305 : i32 to index
    %307 = memref.load %arg2[%306] : memref<16xi32, #tpu.memory_space<smem>>
    %308 = arith.index_cast %305 : i32 to index
    %309 = memref.load %arg3[%308] : memref<16xi32, #tpu.memory_space<smem>>
    %c0_139 = arith.constant 0 : index
    %c0_140 = arith.constant 0 : index
    %c14 = arith.constant 14 : index
    %310 = vector.load %arg7[%c0_139, %c0_140, %c14] : memref<1x1x16xf32, #tpu.memory_space<vmem>>, vector<1x1x1xf32>
    %311 = vector.shape_cast %310 : vector<1x1x1xf32> to vector<1x1xf32>
    %c0_141 = arith.constant 0 : index
    %312 = arith.index_cast %307 : i32 to index
    %c0_142 = arith.constant 0 : index
    %c0_143 = arith.constant 0 : index
    %313 = vector.load %arg6[%c0_141, %312, %c0_142, %c0_143] : memref<1x8x4x16xf32, #tpu.memory_space<vmem>>, vector<1x1x4x16xf32>
    %314 = vector.shape_cast %313 : vector<1x1x4x16xf32> to vector<4x16xf32>
    %c0_144 = arith.constant 0 : index
    %315 = arith.index_cast %309 : i32 to index
    %c0_145 = arith.constant 0 : index
    %c0_146 = arith.constant 0 : index
    %316 = vector.load %arg6[%c0_144, %315, %c0_145, %c0_146] : memref<1x8x4x16xf32, #tpu.memory_space<vmem>>, vector<1x1x4x16xf32>
    %317 = vector.shape_cast %316 : vector<1x1x4x16xf32> to vector<4x16xf32>
    %318 = arith.subf %317, %314 : vector<4x16xf32>
    %319 = vector.broadcast %311 : vector<1x1xf32> to vector<4x16xf32>
    %320 = arith.mulf %319, %318 : vector<4x16xf32>
    %321 = arith.addf %314, %320 : vector<4x16xf32>
    %322 = vector.broadcast %10 : vector<4x1xf32> to vector<4x16xf32>
    %323 = arith.addf %321, %322 : vector<4x16xf32>
    %cst_147 = arith.constant 0.000000e+00 : f32
    %324 = vector.broadcast %cst_147 : f32 to vector<4x16xf32>
    %325 = arith.maximumf %323, %324 : vector<4x16xf32>
    %c15_i32 = arith.constant 15 : i32
    %326 = arith.addi %0, %c15_i32 : i32
    %327 = arith.index_cast %326 : i32 to index
    %328 = memref.load %arg2[%327] : memref<16xi32, #tpu.memory_space<smem>>
    %329 = arith.index_cast %326 : i32 to index
    %330 = memref.load %arg3[%329] : memref<16xi32, #tpu.memory_space<smem>>
    %c0_148 = arith.constant 0 : index
    %c0_149 = arith.constant 0 : index
    %c15 = arith.constant 15 : index
    %331 = vector.load %arg7[%c0_148, %c0_149, %c15] : memref<1x1x16xf32, #tpu.memory_space<vmem>>, vector<1x1x1xf32>
    %332 = vector.shape_cast %331 : vector<1x1x1xf32> to vector<1x1xf32>
    %c0_150 = arith.constant 0 : index
    %333 = arith.index_cast %328 : i32 to index
    %c0_151 = arith.constant 0 : index
    %c0_152 = arith.constant 0 : index
    %334 = vector.load %arg6[%c0_150, %333, %c0_151, %c0_152] : memref<1x8x4x16xf32, #tpu.memory_space<vmem>>, vector<1x1x4x16xf32>
    %335 = vector.shape_cast %334 : vector<1x1x4x16xf32> to vector<4x16xf32>
    %c0_153 = arith.constant 0 : index
    %336 = arith.index_cast %330 : i32 to index
    %c0_154 = arith.constant 0 : index
    %c0_155 = arith.constant 0 : index
    %337 = vector.load %arg6[%c0_153, %336, %c0_154, %c0_155] : memref<1x8x4x16xf32, #tpu.memory_space<vmem>>, vector<1x1x4x16xf32>
    %338 = vector.shape_cast %337 : vector<1x1x4x16xf32> to vector<4x16xf32>
    %339 = arith.subf %338, %335 : vector<4x16xf32>
    %340 = vector.broadcast %332 : vector<1x1xf32> to vector<4x16xf32>
    %341 = arith.mulf %340, %339 : vector<4x16xf32>
    %342 = arith.addf %335, %341 : vector<4x16xf32>
    %343 = vector.broadcast %10 : vector<4x1xf32> to vector<4x16xf32>
    %344 = arith.addf %342, %343 : vector<4x16xf32>
    %cst_156 = arith.constant 0.000000e+00 : f32
    %345 = vector.broadcast %cst_156 : f32 to vector<4x16xf32>
    %346 = arith.maximumf %344, %345 : vector<4x16xf32>
    %347 = tpu.concatenate %31, %52, %73, %94, %115, %136, %157, %178, %199, %220, %241, %262, %283, %304, %325, %346 in 1 : vector<4x16xf32>, vector<4x16xf32>, vector<4x16xf32>, vector<4x16xf32>, vector<4x16xf32>, vector<4x16xf32>, vector<4x16xf32>, vector<4x16xf32>, vector<4x16xf32>, vector<4x16xf32>, vector<4x16xf32>, vector<4x16xf32>, vector<4x16xf32>, vector<4x16xf32>, vector<4x16xf32>, vector<4x16xf32> -> vector<4x256xf32>
    %c0_157 = arith.constant 0 : index
    %c0_158 = arith.constant 0 : index
    %348 = vector.load %arg11[%c0_157, %c0_158] : memref<8x4xf32, #tpu.memory_space<vmem>>, vector<8x4xf32>
    %cst_159 = arith.constant dense<0.000000e+00> : vector<8x256xf32>
    %349 = tpu.matmul %348, %347, %cst_159 {dimension_numbers = #tpu.dot_dimension_numbers<[1], [0], [0], [1], [0, 0, 1, 1], [], []>} : vector<8x4xf32>, vector<4x256xf32>, vector<8x256xf32> -> vector<8x256xf32>
    %350 = arith.addf %9, %349 : vector<8x256xf32>
    %c0_160 = arith.constant 0 : index
    %c0_161 = arith.constant 0 : index
    %351 = vector.load %arg12[%c0_160, %c0_161] : memref<8x1xf32, #tpu.memory_space<vmem>>, vector<8x1xf32>
    %352 = vector.broadcast %351 : vector<8x1xf32> to vector<8x256xf32>
    %353 = arith.addf %350, %352 : vector<8x256xf32>
    %cst_162 = arith.constant 0.000000e+00 : f32
    %354 = vector.broadcast %cst_162 : f32 to vector<8x256xf32>
    %355 = arith.maximumf %353, %354 : vector<8x256xf32>
    %c0_163 = arith.constant 0 : index
    %c0_164 = arith.constant 0 : index
    %c0_165 = arith.constant 0 : index
    %356 = vector.load %arg13[%c0_163, %c0_164, %c0_165] : memref<1x8x256xf32, #tpu.memory_space<vmem>>, vector<1x8x256xf32>
    %357 = vector.shape_cast %356 : vector<1x8x256xf32> to vector<8x256xf32>
    %358 = vector.shape_cast %355 : vector<8x256xf32> to vector<1x8x256xf32>
    tpu.vector_store %arg13[%c0_163, %c0_164, %c0_165], %358 {strides = array<i32>} : memref<1x8x256xf32, #tpu.memory_space<vmem>>, vector<1x8x256xf32>,
    return
  }
  func.func @transform_0(%arg0: i32, %arg1: i32, %arg2: memref<16xi32, #tpu.memory_space<smem>>, %arg3: memref<16xi32, #tpu.memory_space<smem>>) -> (i32, i32, i32) {
    %c0_i32 = arith.constant 0 : i32
    %c0_i32_0 = arith.constant 0 : i32
    return %arg0, %c0_i32, %arg1 : i32, i32, i32
  }
  func.func @transform_1(%arg0: i32, %arg1: i32, %arg2: memref<16xi32, #tpu.memory_space<smem>>, %arg3: memref<16xi32, #tpu.memory_space<smem>>) -> (i32, i32, i32) {
    %c0_i32 = arith.constant 0 : i32
    %c0_i32_0 = arith.constant 0 : i32
    return %arg0, %c0_i32, %arg1 : i32, i32, i32
  }
  func.func @transform_2(%arg0: i32, %arg1: i32, %arg2: memref<16xi32, #tpu.memory_space<smem>>, %arg3: memref<16xi32, #tpu.memory_space<smem>>) -> (i32, i32, i32, i32) {
    %c0_i32 = arith.constant 0 : i32
    %c0_i32_0 = arith.constant 0 : i32
    %c0_i32_1 = arith.constant 0 : i32
    %c0_i32_2 = arith.constant 0 : i32
    return %arg0, %c0_i32, %c0_i32_0, %c0_i32_1 : i32, i32, i32, i32
  }
  func.func @transform_3(%arg0: i32, %arg1: i32, %arg2: memref<16xi32, #tpu.memory_space<smem>>, %arg3: memref<16xi32, #tpu.memory_space<smem>>) -> (i32, i32, i32) {
    %c0_i32 = arith.constant 0 : i32
    %c0_i32_0 = arith.constant 0 : i32
    %c0_i32_1 = arith.constant 0 : i32
    return %arg1, %c0_i32, %c0_i32_0 : i32, i32, i32
  }
  func.func @transform_4(%arg0: i32, %arg1: i32, %arg2: memref<16xi32, #tpu.memory_space<smem>>, %arg3: memref<16xi32, #tpu.memory_space<smem>>) -> (i32, i32) {
    %c0_i32 = arith.constant 0 : i32
    %c0_i32_0 = arith.constant 0 : i32
    %c0_i32_1 = arith.constant 0 : i32
    return %c0_i32, %c0_i32_0 : i32, i32
  }
  func.func @transform_5(%arg0: i32, %arg1: i32, %arg2: memref<16xi32, #tpu.memory_space<smem>>, %arg3: memref<16xi32, #tpu.memory_space<smem>>) -> (i32, i32) {
    %c0_i32 = arith.constant 0 : i32
    %c0_i32_0 = arith.constant 0 : i32
    %c0_i32_1 = arith.constant 0 : i32
    return %c0_i32, %c0_i32_0 : i32, i32
  }
  func.func @transform_6(%arg0: i32, %arg1: i32, %arg2: memref<16xi32, #tpu.memory_space<smem>>, %arg3: memref<16xi32, #tpu.memory_space<smem>>) -> (i32, i32) {
    %c0_i32 = arith.constant 0 : i32
    %c0_i32_0 = arith.constant 0 : i32
    %c0_i32_1 = arith.constant 0 : i32
    return %c0_i32, %c0_i32_0 : i32, i32
  }
  func.func @transform_7(%arg0: i32, %arg1: i32, %arg2: memref<16xi32, #tpu.memory_space<smem>>, %arg3: memref<16xi32, #tpu.memory_space<smem>>) -> (i32, i32) {
    %c0_i32 = arith.constant 0 : i32
    %c0_i32_0 = arith.constant 0 : i32
    %c0_i32_1 = arith.constant 0 : i32
    return %c0_i32, %c0_i32_0 : i32, i32
  }
  func.func @transform_8(%arg0: i32, %arg1: i32, %arg2: memref<16xi32, #tpu.memory_space<smem>>, %arg3: memref<16xi32, #tpu.memory_space<smem>>) -> (i32, i32) {
    %c0_i32 = arith.constant 0 : i32
    %c0_i32_0 = arith.constant 0 : i32
    %c0_i32_1 = arith.constant 0 : i32
    return %c0_i32, %c0_i32_0 : i32, i32
  }
  func.func @transform_9(%arg0: i32, %arg1: i32, %arg2: memref<16xi32, #tpu.memory_space<smem>>, %arg3: memref<16xi32, #tpu.memory_space<smem>>) -> (i32, i32, i32) {
    %c0_i32 = arith.constant 0 : i32
    %c0_i32_0 = arith.constant 0 : i32
    return %arg0, %c0_i32, %arg1 : i32, i32, i32
  }
}

</mosaic_0001>

<bundles_post_ra>
// kernel: tpu_custom_call.1
= control target key start
LH: loop header
LB: loop body
LE: loop exit
PB: predicated region body
PF: predicated region fallthrough
CT: control target
= control target key end

     0   :  { %s2298_s0 = inlined_call_operand.hbm [shape: s32[16], index: 0, kind: input, shape index: {}]   ;;  %s2299_s2 = inlined_call_operand.hbm [shape: f32[2,4,256], index: 2, kind: input, shape index: {}]   ;;  %s2300_s3 = inlined_call_operand.hbm [shape: f32[2,4,256], index: 3, kind: input, shape index: {}]   ;;  %s2301_s4 = inlined_call_operand.vmem [shape: f32[2,8,4,16], index: 4, kind: input, shape index: {}]   ;;  %s2302_s5 = inlined_call_operand.hbm [shape: f32[1,1,16], index: 5, kind: input, shape index: {}]   ;;  %s2303_s6 = inlined_call_operand.vmem [shape: f32[4,1], index: 6, kind: input, shape index: {}]   ;;  %s2304_s7 = inlined_call_operand.vmem [shape: f32[8,4], index: 7, kind: input, shape index: {}]   ;;  %s2305_s8 = inlined_call_operand.vmem [shape: f32[8,4], index: 8, kind: input, shape index: {}]   ;;  %s2306_s9 = inlined_call_operand.vmem [shape: f32[8,4], index: 9, kind: input, shape index: {}]   ;;  %s2307_s10 = inlined_call_operand.vmem [shape: f32[8,1], index: 10, kind: input, shape index: {}]   ;;  %s2308_s11 = inlined_call_operand.hbm [shape: f32[2,8,256], index: 11, kind: output, shape index: {}]   ;;  %s2309_s1 = inlined_call_operand.hbm [shape: s32[16], index: 1, kind: input, shape index: {}]  }
   0x1   :  { %2328 = sst [smem:[#allocation28_spill]] %s2299_s2  ;;  %s1538_s19 = scalar_lea.hbm %s2298_s0, 16 }
   0x2   :  { %2329 = sst [smem:[#allocation29_spill]] %s2300_s3  ;;  %p1539_p0 = scmp.ne.s32.totalorder %s2298_s0, %s1538_s19 }
   0x3   :  { %2330 = sst [smem:[#allocation30_spill]] %s2301_s4  ;;  %p1542_p1 = scmp.lt.u32.totalorder %s1538_s19, %s2298_s0 }
   0x4   :  { %2331 = sst [smem:[#allocation31_spill]] %s2302_s5 }
   0x5   :  { %2332 = sst [smem:[#allocation32_spill]] %s2303_s6  ;;  %p1544_p2 = pnand %p1542_p1, %p1539_p0 }
   0x6   :  { %2333 = sst [smem:[#allocation33_spill]] %s2306_s9 }
   0x7   :  { %2334 = sst [smem:[#allocation34_spill]] %s2307_s10 }
   0x8   :  { %2335 = sst [smem:[#allocation35_spill]] %s2308_s11 }
   0x9   :  { %1547 = shalt.err (!%p1544_p2)  }
   0xa   :  { %s1740_s24 = smov [#allocation3]   ;;  %s1548_s29 = scalar_lea.hbm %s2309_s1, 16 }
   0xb   :  { %17 = dma.hbm_to_smem %s2298_s0, 16, %s1740_s24, [#allocation2] }
   0xc   :  { %p1549_p3 = scmp.ne.s32.totalorder %s2309_s1, %s1548_s29  ;;  %p1552_p4 = scmp.lt.u32.totalorder %s1548_s29, %s2309_s1 }
   0xe   :  { %p1554_p5 = pnand %p1552_p4, %p1549_p3 }
  0x10   :  { %1557 = shalt.err (!%p1554_p5)  }
  0x11   :  { %s1741_s15 = smov [#allocation4]  }
  0x12   :  { %19 = dma.hbm_to_smem %s2309_s1, 16, %s1741_s15, [#allocation2] }
  0x13   :  { %1698 = dma.done.wait [#allocation2], 32 }
  0x14   :  { %1699 = vsyncadd [#allocation2], 4294967264 }
  0x15   :  { %21 = sfence }
  0x16   :  { %22 = vsyncpa [#allocation6], 0 }
  0x17   :  { %24 = vsyncpa [#allocation6 + $0x1], 0 }
  0x18   :  { %25 = vsyncpa [#allocation9], 0 }
  0x19   :  { %27 = vsyncpa [#allocation9 + $0x1], 0 }
  0x1a   :  { %28 = vsyncpa [#allocation7], 0 }
  0x1b   :  { %30 = vsyncpa [#allocation7 + $0x1], 0  ;;  %s1854_s0 = smov 0   ;;  %s1856_s18 = smov 0  }
  0x1c   :  { %s1858_s19 = smov 0   ;;  %s1860_s20 = smov 0  }
  0x1d   :  { %s1862_s21 = smov 0   ;;  %s1864_s1 = smov 0  }
  0x1e LB: > { %2336 = sst [smem:[#allocation17_spill]] %s1718_s0  ;;  %s1885_s22 = sadd.s32 4294967295, %s1738_s1   ;;  %s1738_s1 = sphi %s1864_s1, %s36_s1   ;;  %s1734_s21 = sphi %s1862_s21, %s2382_s21   ;;  %s1730_s20 = sphi %s1860_s20, %s2381_s20   ;;  %s1726_s19 = sphi %s1858_s19, %s2380_s19   ;;  %s1722_s18 = sphi %s1856_s18, %s2379_s18   ;;  %s1718_s0 = sphi %s1854_s0, %s2378_s0  }
  0x1f   : > { %2337 = sst [smem:[#allocation18_spill]] %s1722_s18  ;;  %s1312_s23 = sadd.s32 4294967294, %s1738_s1  }
  0x20   : > { %2338 = sst [smem:[#allocation19_spill]] %s1726_s19  ;;  %p70_p6 = scmp.ne.s32.totalorder %s1722_s18, %s1718_s0 }
  0x21   : > { %2339 = sst [smem:[#allocation20_spill]] %s1730_s20  ;;  %p2311_p7 = scmp.eq.s32.totalorder %s1885_s22, 0 }
  0x22   : > { %2340 = sst [smem:[#allocation21_spill]] %s1734_s21  ;;  %p287_p9 = scmp.eq.s32.totalorder %s1312_s23, 1 }
  0x23   : > { %2341 = sst [smem:[#allocation22_spill]] %s1738_s1  ;;  %p1894_p10 = por %p2311_p7, %p70_p6 }
  0x24   : > { %p1313_p11 = scmp.ge.s32.totalorder %s1738_s1, 1  ;;  %p1899_p12 = por %p287_p9, %p70_p6 }
  0x25   : > { %s2342_s24 = scalar_select %p1894_p10, 1, 0 }
  0x26   : > { %s2343_s25 = scalar_select %p1899_p12, 1, 0 }
  0x27   : > { %p294_p13 = scmp.lt.s32.totalorder %s1738_s1, 3  ;;  %s1742_s27 = smov [#allocation10]  }
  0x28   : > { %2344 = sst [smem:[#allocation23_spill]] %s2343_s25  ;;  %s309_s28 = sshll.u32 %s1742_s27, 4  ;;  %s310_s28 = int_to_ptr.vmem [resolvable:$true] %s309_s28 }
  0x29   : > { %p1904_p0 = pnand %p1313_p11, %p294_p13  ;;  %s48_s30 = sadd.s32 1, %s1734_s21 }
  0x2a   : > { %p1919_p4 = scmp.ge.s32.totalorder %s48_s30, 2  ;;  %s2348_s5 = sld [smem:[#allocation31_spill]] }
  0x2b   : > { %s2345_s26 = scalar_select %p1904_p0, 1, 0 }
  0x2c   : > { %p1424_p2 = pneg %p1904_p0 }
  0x2d   : > { %s2347_s13 = scalar_select %p1919_p4, 1, 0 }
  0x2e   : > { %p1913_p3 = pnand %p1424_p2, %p2311_p7 }
  0x30   : > { %s1558_s16 = scalar_lea.hbm %s2348_s5, 16  ;;  %p1560_p6 = pneg %p1913_p3 }
  0x31   : > { %p1559_p5 = scmp.ne.s32.totalorder %s2348_s5, %s1558_s16  ;;  %p1565_p13 = scmp.lt.u32.totalorder %s1558_s16, %s2348_s5 }
  0x33   : > { %p1561_p9 = pnand %p1560_p6, %p1559_p5 }
  0x35   : > { %p1562_p11 = pneg %p1561_p9 }
  0x37   : > { %p1567_p2 = pnand %p1565_p13, %p1562_p11 }
  0x39   : > { %1570 = shalt.err (!%p1567_p2)
}
  0x3a   : > { %s1571_s12 = scalar_lea.vmem %s310_s28, 16  ;;  %s1578_s14 = scalar_lea.vmem %s310_s28, 32 }
  0x3b   : > { %p1572_p1 = scmp.ne.s32.totalorder %s310_s28, %s1571_s12  ;;  %p1579_p12 = scmp.lt.s32.totalorder %s310_s28, %s310_s28 }
  0x3c   : > { %p1580_p10 = scmp.lt.s32.totalorder %s1578_s14, %s1571_s12 }
  0x3d   : > { %p1574_p7 = pnand %p1572_p1, %p1560_p6 }
  0x3e   : > { %p1581_p0 = por %p1580_p10, %p1579_p12 }
  0x3f   : > { %p1575_p8 = pneg %p1574_p7 }
  0x41   : > { %p1582_p4 = pnand %p1581_p0, %p1575_p8 }
  0x43   : > { %1585 = shalt.err (!%p1582_p4)
}
  0x44   : > { %1427 = dma.hbm_to_vmem [thread:$0]  (!%p1913_p3), %s2348_s5, 16, %s310_s28, [#allocation9]  }
  0x45   : > { %p2349_p7 = scmp.ne.s32.totalorder %s2347_s13, 0  ;;  %p64_p8 = scmp.ne.s32.totalorder %s1726_s19, %s1722_s18 }
  0x46   : > { %p65_p10 = scmp.eq.s32.totalorder %s1738_s1, 0  ;;  %p1440_p12 = scmp.lt.s32.totalorder %s1738_s1, 2 }
  0x47   : > { %s2384_s30 = smov (%p2349_p7, %s48_s30), 0  ;;  %p2351_p4 = scmp.eq.s32.totalorder %s1885_s22, 1 }
  0x48   : > { %2350 = sst [smem:[#allocation24_spill]] %s2384_s30  ;;  %s52_s25 = ssub.s32 %s1734_s21, %s2384_s30 }
  0x49   : > { %p55_p0 = scmp.eq.s32.totalorder %s52_s25, 0  ;;  %p66_p1 = por %p65_p10, %p64_p8 }
  0x4a   : > { %p1951_p5 = por %p2351_p4, %p64_p8  ;;  %s335_s12 = sand.u32 1, %s1726_s19  }
  0x4b   : > { %s2354_s16 = sadd.s32 1, %s1726_s19  ;;  %s1961_s28 = sshll.u32 %s335_s12, 3 }
  0x4c   : > { %s2352_s29 = scalar_select %p1951_p5, 1, 0 }
  0x4d   : > { %s1959_s23 = scalar_select %p55_p0, %s1726_s19, %s2354_s16  }
  0x4e   : > { %2353 = sst [smem:[#allocation25_spill]] %s2352_s29  ;;  %s1406_s13 = sshll.u32 %s1734_s21, 7 }
  0x4f   : > { %2355 = sst [smem:[#allocation26_spill]] %s1959_s23  ;;  %s2356_s2 = sld [smem:[#allocation28_spill]] }
  0x50   : > { %s339_s17 = scalar_lea.vmem [#allocation5], %s1961_s28  ;;  %p1972_p3 = pnand %p1440_p12, %p66_p1 }
  0x51   : > { %s349_s25 = sshll.u32 %s339_s17, 4  ;;  %s2358_s3 = sld [smem:[#allocation29_spill]]  ;;  %s1970_s25 = int_to_ptr.vmem [resolvable:$true] %s349_s25 }
  0x52   : > { %s356_s14 = sand.u32 1, %s1738_s1   ;;  %s336_s21 = scalar_lea.sflag [#allocation6], %s335_s12 }
  0x53   : > { %p1588_p9 = pneg %p1972_p3 }
  0x55   : > { %s1967_s15 = scalar_lea.hbm %s2356_s2, %s1406_s13  ;;  %s1591_s0 = scalar_lea.hbm %s2356_s2, 256 }
  0x56   : > { %s1586_s23 = scalar_lea.hbm %s1967_s15, 128  ;;  %p1592_p2 = scmp.lt.u32.totalorder %s1967_s15, %s2356_s2 }
  0x57   : > { %s1979_s27 = scalar_lea.hbm %s2358_s3, %s1406_s13  ;;  %p1587_p6 = scmp.ne.s32.totalorder %s1967_s15, %s1586_s23 }
  0x58   : > { %p1593_p7 = scmp.lt.u32.totalorder %s1591_s0, %s1586_s23  ;;  %p1595_p10 = scmp.lt.u32.totalorder %s1586_s23, %s1967_s15 }
  0x59   : > { %p1589_p11 = pnand %p1588_p9, %p1587_p6 }
  0x5a   : > { %p1594_p8 = por %p1593_p7, %p1592_p2 }
  0x5b   : > { %p1590_p13 = pneg %p1589_p11 }
  0x5c   : > { %p1596_p12 = por %p1595_p10, %p1594_p8 }
  0x5e   : > { %p1597_p0 = pnand %p1596_p12, %p1590_p13 }
  0x60   : > { %1600 = shalt.err (!%p1597_p0)
}
  0x61   : > { %s1601_s30 = scalar_lea.vmem %s1970_s25, 128  ;;  %s1743_s19 = smov [#allocation5]  }
  0x62   : > { %p1602_p1 = scmp.ne.s32.totalorder %s1970_s25, %s1601_s30  ;;  %s1606_s12 = sshll.u32 %s1743_s19, 4  ;;  %s1607_s12 = int_to_ptr.vmem [resolvable:$false] %s1606_s12 }
  0x63   : > { %s1608_s11 = scalar_lea.vmem %s1607_s12, 256  ;;  %p1609_p11 = scmp.lt.s32.totalorder %s1970_s25, %s1607_s12 }
  0x64   : > { %p1604_p4 = pnand %p1602_p1, %p1588_p9  ;;  %p1610_p2 = scmp.lt.s32.totalorder %s1608_s11, %s1601_s30 }
  0x66   : > { %p1605_p6 = pneg %p1604_p4  ;;  %p1611_p7 = por %p1610_p2, %p1609_p11 }
  0x68   : > { %p1612_p8 = pnand %p1611_p7, %p1605_p6 }
  0x6a   : > { %1615 = shalt.err (!%p1612_p8)
}
  0x6b   : > { %1431 = dma.hbm_to_vmem [thread:$0]  (!%p1972_p3), %s1967_s15, 128, %s1970_s25, %s336_s21  }
  0x6c   : > { %s360_s0 = scalar_lea.vmem [#allocation8], %s1961_s28  ;;  %s357_s13 = scalar_lea.sflag [#allocation9], %s356_s14 }
  0x6d   : > { %s370_s23 = sshll.u32 %s360_s0, 4  ;;  %s1616_s17 = scalar_lea.hbm %s1979_s27, 128  ;;  %s371_s23 = int_to_ptr.vmem [resolvable:$true] %s370_s23 }
  0x6e   : > { %p1617_p13 = scmp.ne.s32.totalorder %s1979_s27, %s1616_s17  ;;  %s1621_s19 = scalar_lea.hbm %s2358_s3, 256 }
  0x6f   : > { %p1622_p0 = scmp.lt.u32.totalorder %s1979_s27, %s2358_s3  ;;  %p1623_p1 = scmp.lt.u32.totalorder %s1621_s19, %s1616_s17 }
  0x70   : > { %p1619_p10 = pnand %p1617_p13, %p1588_p9  ;;  %p1625_p6 = scmp.lt.u32.totalorder %s1616_s17, %s1979_s27 }
  0x71   : > { %p1624_p4 = por %p1623_p1, %p1622_p0 }
  0x72   : > { %p1620_p12 = pneg %p1619_p10 }
  0x73   : > { %p1626_p11 = por %p1625_p6, %p1624_p4 }
  0x75   : > { %p1627_p2 = pnand %p1626_p11, %p1620_p12 }
  0x77   : > { %1630 = shalt.err (!%p1627_p2)
}
  0x78   : > { %s1631_s21 = scalar_lea.vmem %s371_s23, 128  ;;  %s1744_s28 = smov [#allocation8]  }
  0x79   : > { %p1632_p7 = scmp.ne.s32.totalorder %s371_s23, %s1631_s21  ;;  %s1636_s15 = sshll.u32 %s1744_s28, 4  ;;  %s1637_s15 = int_to_ptr.vmem [resolvable:$false] %s1636_s15 }
  0x7a   : > { %s1638_s25 = scalar_lea.vmem %s1637_s15, 256  ;;  %p1639_p10 = scmp.lt.s32.totalorder %s371_s23, %s1637_s15 }
  0x7b   : > { %p1634_p8 = pnand %p1632_p7, %p1588_p9  ;;  %p1640_p5 = scmp.lt.s32.totalorder %s1638_s25, %s1631_s21 }
  0x7d   : > { %p1635_p13 = pneg %p1634_p8  ;;  %p1641_p0 = por %p1640_p5, %p1639_p10 }
  0x7f   : > { %p1642_p1 = pnand %p1641_p0, %p1635_p13 }
  0x81   : > { %1645 = shalt.err (!%p1642_p1)
}
  0x82   : > { %1434 = dma.hbm_to_vmem [thread:$0]  (!%p1972_p3), %s1979_s27, 128, %s371_s23, %s357_s13  }
  0x83   : > { %p2359_p12 = scmp.ne.s32.totalorder %s2345_s26, 0 }
  0x85   : > { %387 = sbr.rel (%p2359_p12) target bundleno = 679 (0x2a7), region = 56 }
  0x8c   : > { %s2032_s14 = sand.u32 1, %s1722_s18   ;;  %p2361_p5 = scmp.ne.s32.totalorder %s2342_s24, 0 }
  0x8d   : > { %2360 = sst [smem:[#allocation27_spill]] %s2032_s14  ;;  %s1323_s0 = sshll.u32 %s2032_s14, 3 }
  0x8e   : > { %s390_s17 = scalar_lea.sflag [#allocation6], %s2032_s14  ;;  %s2036_s5 = scalar_lea.vmem [#allocation5], %s1323_s0 }
  0x8f   : > { %1701 = dma.done.wait (%p2361_p5), %s390_s17, 128  }
  0x90   : > { %1703 = vsyncadd (%p2361_p5), %s390_s17, 4294967168  ;;  %s398_s16 = sand.u32 1, %s1885_s22   ;;  %s2043_s27 = scalar_lea.vmem [#allocation8], %s1323_s0 }
  0x91   : > { %s399_s26 = scalar_lea.sflag [#allocation9], %s398_s16 }
  0x92   : > { %1705 = dma.done.wait (%p2361_p5), %s399_s26, 128  }
  0x93   : > { %1707 = vsyncadd (%p2361_p5), %s399_s26, 4294967168  ;;  %p2362_p3 = scmp.eq.s32.totalorder %s1885_s22, 0 }
  0x95   : > { %1709 = dma.done.wait (%p2362_p3), [#allocation9], 16   ;;  %p2363_p9 = pmov %p2362_p3 }
  0x96   : > { %v1745_v0 = vmov 10   ;;  %v1746_v1 = vmov 9   ;;  %v1337_v2 = vld [vmem:[#allocation10] ss:$0 sm:$0xff]  ;;  %v1747_v3 = vmov 2   ;;  %v1748_v4 = vmov 1  }
  0x97   : > { %1711 = vsyncadd (%p2363_p9), [#allocation9], 4294967280  ;;  %1520 = vset.pattern.permute.xlu1 %v1745_v0  ;;  %1518 = vset.pattern.permute.xlu0 %v1746_v1  ;;  %v1749_v5 = vmov 11   ;;  %v1750_v6 = vmov 3   ;;  %v1751_v7 = vmov 12   ;;  %v1752_v8 = vmov 4  }
  0x98   : > { %828 = vperm.xlu1 %1520, %v1337_v2   ;;  %810 = vperm.xlu0 %1518, %v1337_v2   ;;  %s2364_s6 = sld [smem:[#allocation32_spill]]  ;;  %v1753_v10 = vmov 0   ;;  %v1754_v11 = vmov 14   ;;  %v1755_v12 = vmov 7   ;;  %v1756_v13 = vmov 13   ;;  %p453_p4 = scmp.lt.s32.totalorder %s1730_s20, 1 }
  0x99   : > { %v1757_v14 = vmov 5   ;;  %v1758_v15 = vmov 6   ;;  %v1759_v16 = vmov 15   ;;  %v1760_v17 = vmov 8   ;;  %s1374_s13 = sld [smem:[#allocation3 + $0xa]]  ;;  %s1370_s21 = sld [smem:[#allocation3 + $0x9]] }
  0x9a   : > { %s454_s23 = scalar_select %p453_p4, %s1730_s20, 1  ;;  %vm470_vm0 = vcmask 1043456   ;;  %vm466_vm1 = vcmask 31744   ;;  %vm981_vm2 = vcmask 130048   ;;  %vm983_vm3 = vcmask 261120  }
  0x9b   : > { %s1375_s30 = sld [smem:[#allocation4 + $0xa]]  ;;  %s1378_s28 = sld [smem:[#allocation3 + $0xb]]  ;;  %vm985_vm4 = vcmask 392192   ;;  %vm987_vm5 = vcmask 523264   ;;  %vm989_vm6 = vcmask 654336   ;;  %vm991_vm7 = vcmask 785408  }
  0x9c   : > { %1521 = vset.pattern.permute.xlu1 %v1747_v3  ;;  %1519 = vset.pattern.permute.xlu0 %v1748_v4  ;;  %s1342_s19 = sld [smem:[#allocation3 + $0x2]]  ;;  %s1408_s12 = sshll.u32 %s454_s23, 5  ;;  %vm993_vm8 = vcmask 916480  }
  0x9d   : > { %684 = vperm.xlu1 %1521, %v1337_v2   ;;  %666 = vperm.xlu0 %1519, %v1337_v2   ;;  %s1343_s11 = sld [smem:[#allocation4 + $0x2]]  ;;  %s1371_s15 = sld [smem:[#allocation4 + $0x9]] }
  0x9e   : > { %v626_v9 = vld [vmem:[%s2364_s6] sm:$0xf]  ;;  %s2365_s4 = sld [smem:[#allocation30_spill]]  ;;  %s1379_s24 = sld [smem:[#allocation4 + $0xb]] }
  0x9f   : > { %s1376_s16 = sshll.u32 %s1374_s13, 2  ;;  %s1338_s23 = sld [smem:[#allocation3 + $0x1]] }
  0xa0   : > { %s1339_s2 = sld [smem:[#allocation4 + $0x1]]  ;;  %s1372_s0 = sshll.u32 %s1370_s21, 2 }
  0xa1   : > { %1522 = vset.pattern.permute.xlu1 %v1749_v5  ;;  %1523 = vset.pattern.permute.xlu0 %v1750_v6  ;;  %s1377_s26 = sshll.u32 %s1375_s30, 2  ;;  %s1346_s13 = sld [smem:[#allocation3 + $0x3]] }
  0xa2   : > { %846 = vperm.xlu1 %1522, %v1337_v2   ;;  %702 = vperm.xlu0 %1523, %v1337_v2   ;;  %s1344_s22 = sshll.u32 %s1342_s19, 2  ;;  %s1347_s19 = sld [smem:[#allocation4 + $0x3]] }
  0xa3   : > { %s1373_s18 = sshll.u32 %s1371_s15, 2  ;;  %s2084_s21 = sld [smem:[#allocation4 + $0xc]] }
  0xa4   : > { %s2061_s17 = scalar_lea.vmem %s2365_s4, %s1408_s12  ;;  %s1345_s12 = sshll.u32 %s1343_s11, 2 }
  0xa5   : > { %s2064_s3 = scalar_lea.vmem %s2061_s17, %s1376_s16  ;;  %s2067_s6 = scalar_lea.vmem %s2061_s17, %s1377_s26 }
  0xa6   : > { %1524 = vset.pattern.permute.xlu1 %v1751_v7  ;;  %1526 = vset.pattern.permute.xlu0 %v1752_v8  ;;  %s2070_s25 = scalar_lea.vmem %s2061_s17, %s1344_s22  ;;  %s1380_s4 = sshll.u32 %s1378_s28, 2  ;;  %v822_v25 = vld [vmem:[%s2064_s3] sm:$0xf] }
  0xa7   : > { %864 = vperm.xlu1 %1524, %v1337_v2   ;;  %720 = vperm.xlu0 %1526, %v1337_v2   ;;  %s2073_s30 = scalar_lea.vmem %s2061_s17, %s1345_s12  ;;  %s803_s1 = scalar_lea.vmem %s2061_s17, %s1372_s0  ;;  %v825_v27 = vld [vmem:[%s2067_s6] sm:$0xf] }
  0xa8   : > { %s2077_s29 = scalar_lea.vmem %s2061_s17, %s1380_s4  ;;  %s2080_s16 = scalar_lea.vmem %s2061_s17, %s1373_s18  ;;  %v804_v23 = vld [vmem:[%s803_s1] sm:$0xf]  ;;  %v826_v36 = vsub.f32 %v825_v27, %v822_v25 }
  0xa9   : > { %s1381_s26 = sshll.u32 %s1379_s24, 2  ;;  %s1340_s9 = sshll.u32 %s1338_s23, 2  ;;  %v807_v26 = vld [vmem:[%s2080_s16] sm:$0xf] }
  0xaa   : > { %s1341_s22 = sshll.u32 %s1339_s2, 2  ;;  %s2082_s11 = sld [smem:[#allocation3 + $0xc]]  ;;  %v678_v29 = vld [vmem:[%s2070_s25] sm:$0xf]  ;;  %v808_v32 = vsub.f32 %v807_v26, %v804_v23 }
  0xab   : > { %1525 = vset.pattern.permute.xlu1 %v1753_v10  ;;  %1529 = vset.pattern.permute.xlu0 %v1754_v11  ;;  %s2089_s28 = scalar_lea.vmem %s2061_s17, %s1381_s26  ;;  %s2091_s15 = sld [smem:[#allocation3 + $0x4]]  ;;  %v681_v30 = vld [vmem:[%s2073_s30] sm:$0xf] }
  0xac   : > { %900 = vperm.xlu0 %1529, %v1337_v2   ;;  %650 = vperm.xlu1 %1525, %v626_v9   ;;  %s659_s4 = scalar_lea.vmem %s2061_s17, %s1340_s9  ;;  %s2094_s12 = sld [smem:[#allocation4 + $0x4]]  ;;  %v2128_v35 = vld [vmem:[%s2077_s29] sm:$0xf]  ;;  %v682_v37 = vsub.f32 %v681_v30, %v678_v29 }
  0xad   : > { %s662_s18 = scalar_lea.vmem %s2061_s17, %s1341_s22  ;;  %s1348_s2 = sshll.u32 %s1346_s13, 2  ;;  %v660_v21 = vld [vmem:[%s659_s4] sm:$0xf] }
  0xae   : > { %s1349_s24 = sshll.u32 %s1347_s19, 2  ;;  %s2097_s23 = sld [smem:[#allocation3 + $0xe]]  ;;  %v663_v22 = vld [vmem:[%s662_s18] sm:$0xf] }
  0xaf   : > { %s2099_s0 = sld [smem:[#allocation4 + $0xe]]  ;;  %s2101_s26 = sld [smem:[#allocation3 + $0xd]]  ;;  %v664_v28 = vsub.f32 %v663_v22, %v660_v21  ;;  %v843_v39 = vld [vmem:[%s2089_s28] sm:$0xf] }
  0xb0   : > { %1532 = vset.pattern.permute.xlu0 %v1755_v12  ;;  %1527 = vset.pattern.permute.xlu1 %v1756_v13  ;;  %s695_s20 = scalar_lea.vmem %s2061_s17, %s1348_s2  ;;  %s2104_s9 = sld [smem:[#allocation4 + $0xd]]  ;;  %v844_v48 = vsub.f32 %v843_v39, %v2128_v35  ;;  %v461_v27 = vld [vmem:[%s2036_s5] sm:$0xff] }
  0xb1   : > { %774 = vperm.xlu0 %1532, %v1337_v2   ;;  %882 = vperm.xlu1 %1527, %v1337_v2   ;;  %s698_s13 = scalar_lea.vmem %s2061_s17, %s1349_s24  ;;  %s2107_s19 = sld [smem:[#allocation3 + $0x7]]  ;;  %v696_v33 = vld [vmem:[%s695_s20] sm:$0xf]  ;;  %v547_v30 = vcombine.high %v461_v27, %v461_v27 }
  0xb2   : > { %s1384_s22 = sshll.u32 %s2082_s11, 2  ;;  %s1385_s14 = sshll.u32 %s2084_s21, 2  ;;  %v699_v34 = vld [vmem:[%s698_s13] sm:$0xf] }
  0xb3   : > { %s1352_s2 = sshll.u32 %s2091_s15, 2  ;;  %s2114_s10 = sld [smem:[#allocation3 + $0x5]]  ;;  %v700_v42 = vsub.f32 %v699_v34, %v696_v33  ;;  %1332 = vmatprep.subr.msk.mxu0 %vm470_vm0, %v547_v30 }
  0xb4   : > { %s1353_s4 = sshll.u32 %s2094_s12, 2  ;;  %s2118_s18 = sld [smem:[#allocation4 + $0x5]]  ;;  %1333 = vmatpush1.msk.msra.mxu0 %vm470_vm0, %v461_v27 }
  0xb5   : > { %1528 = vset.pattern.permute.xlu1 %v1757_v14  ;;  %1535 = vset.pattern.permute.xlu0 %v1753_v10  ;;  %s857_s1 = scalar_lea.vmem %s2061_s17, %s1384_s22  ;;  %s2123_s3 = sld [smem:[#allocation4 + $0x7]] }
  0xb6   : > { %738 = vperm.xlu1 %1528, %v1337_v2   ;;  %s860_s16 = scalar_lea.vmem %s2061_s17, %s1385_s14  ;;  %s713_s6 = scalar_lea.vmem %s2061_s17, %s1352_s2  ;;  %v2133_v41 = vld [vmem:[%s857_s1] sm:$0xf] }
  0xb7   : > { %s716_s11 = scalar_lea.vmem %s2061_s17, %s1353_s4  ;;  %s1388_s21 = sshll.u32 %s2101_s26, 2  ;;  %v861_v43 = vld [vmem:[%s860_s16] sm:$0xf] }
  0xb8   : > { %s1392_s25 = sshll.u32 %s2097_s23, 2  ;;  %s1389_s20 = sshll.u32 %s2104_s9, 2  ;;  %v714_v46 = vld [vmem:[%s713_s6] sm:$0xf]  ;;  %v862_v53 = vsub.f32 %v861_v43, %v2133_v41 }
  0xb9   : > { %s1393_s29 = sshll.u32 %s2099_s0, 2  ;;  %s2138_s14 = sld [smem:[#allocation3 + $0x6]]  ;;  %v717_v47 = vld [vmem:[%s716_s11] sm:$0xf] }
  0xba   : > { %1530 = vset.pattern.permute.xlu1 %v1758_v15  ;;  %s875_s30 = scalar_lea.vmem %s2061_s17, %s1388_s21  ;;  %s2141_s28 = sld [smem:[#allocation4 + $0x6]]  ;;  %v718_v54 = vsub.f32 %v717_v47, %v714_v46  ;;  %v460_v43 = vld [vmem:[%s2304_s7] sm:$0xff] }
  0xbb   : > { %756 = vperm.xlu1 %1530, %v1337_v2   ;;  %s878_s15 = scalar_lea.vmem %s2061_s17, %s1389_s20  ;;  %s1356_s12 = sshll.u32 %s2114_s10, 2  ;;  %v2152_v57 = vld [vmem:[%s875_s30] sm:$0xf] }
  0xbc   : > { %s893_s24 = scalar_lea.vmem %s2061_s17, %s1392_s25  ;;  %s1357_s23 = sshll.u32 %s2118_s18, 2  ;;  %v879_v58 = vld [vmem:[%s878_s15] sm:$0xf] }
  0xbd   : > { %s896_s0 = scalar_lea.vmem %s2061_s17, %s1393_s29  ;;  %s1364_s26 = sshll.u32 %s2107_s19, 2  ;;  %v2162_v63 = vld [vmem:[%s893_s24] sm:$0xf]  ;;  %v880_v6 = vsub.f32 %v879_v58, %v2152_v57 }
  0xbe   : > { %s731_s10 = scalar_lea.vmem %s2061_s17, %s1356_s12  ;;  %s2155_s9 = sld [smem:[#allocation3 + $0xf]]  ;;  %v897_v5 = vld [vmem:[%s896_s0] sm:$0xf] }
  0xbf   : > { %1531 = vset.pattern.permute.xlu1 %v1759_v16  ;;  %s734_s13 = scalar_lea.vmem %s2061_s17, %s1357_s23  ;;  %s2160_s22 = sld [smem:[#allocation4 + $0xf]]  ;;  %v2169_v7 = vld [vmem:[%s731_s10] sm:$0xf]  ;;  %v898_v14 = vsub.f32 %v897_v5, %v2162_v63 }
  0xc0   : > { %918 = vperm.xlu1 %1531, %v1337_v2   ;;  %s1365_s19 = sshll.u32 %s2123_s3, 2  ;;  %s767_s2 = scalar_lea.vmem %s2061_s17, %s1364_s26  ;;  %v735_v12 = vld [vmem:[%s734_s13] sm:$0xf] }
  0xc1   : > { %s1360_s4 = sshll.u32 %s2138_s14, 2  ;;  %s1361_s18 = sshll.u32 %s2141_s28, 2 }
  0xc2   : > { %s770_s1 = scalar_lea.vmem %s2061_s17, %s1365_s19  ;;  %s2177_s3 = sld [smem:[#allocation3 + $0x8]] }
  0xc3   : > { %s1761_s16 = smov 16   ;;  %s2180_s6 = sld [smem:[#allocation4 + $0x8]]  ;;  %v771_v22 = vld [vmem:[%s770_s1] sm:$0xf] }
  0xc4   : > { %1533 = vset.pattern.permute.xlu1 %v1760_v17  ;;  %s749_s11 = scalar_lea.vmem %s2061_s17, %s1360_s4  ;;  %s752_s21 = scalar_lea.vmem %s2061_s17, %s1361_s18 }
  0xc5   : > { %792 = vperm.xlu1 %1533, %v1337_v2   ;;  %s1396_s25 = sshll.u32 %s2155_s9, 2  ;;  %s1397_s20 = sshll.u32 %s2160_s22, 2 }
  0xc6   : > { %s1762_s29 = smov 32   ;;  %s2195_s14 = sld [smem:[#allocation3]] }
  0xc7   : > { %s2197_s5 = sld [smem:[#allocation4]]  ;;  %s911_s30 = scalar_lea.vmem %s2061_s17, %s1396_s25 }
  0xc8   : > { %s914_s28 = scalar_lea.vmem %s2061_s17, %s1397_s20  ;;  %s1368_s15 = sshll.u32 %s2177_s3, 2  ;;  %v912_v47 = vld [vmem:[%s911_s30] sm:$0xf] }
  0xc9   : > { %1534 = vset.pattern.permute.xlu1 %v1753_v10  ;;  %s1764_s23 = smov 48   ;;  %s1369_s0 = sshll.u32 %s2180_s6, 2 }
  0xca   : > { %643 = vperm.xlu1 %1534, %v1337_v2   ;;  %s785_s26 = scalar_lea.vmem %s2061_s17, %s1368_s15  ;;  %s788_s10 = scalar_lea.vmem %s2061_s17, %s1369_s0 }
  0xcb   : > { %s1765_s9 = smov 64   ;;  %s1767_s1 = smov 96  }
  0xcc   : > { %s1335_s13 = sshll.u32 %s2195_s14, 2  ;;  %s2366_s6 = sld [smem:[#allocation34_spill]] }
  0xcd   : > { %s1336_s22 = sshll.u32 %s2197_s5, 2  ;;  %s631_s4 = scalar_lea.vmem %s2061_s17, %s1335_s13 }
  0xce   : > { %s634_s18 = scalar_lea.vmem %s2061_s17, %s1336_s22  ;;  %s1768_s17 = smov 112  }
  0xcf   : > { %s2370_s5 = sld [smem:[#allocation25_spill]] }
  0xd5   : > { %p2372_p11 = scmp.ne.s32.totalorder %s2370_s5, 0 }
 0x117   : > { %v2086_v18 = vpop.permute.xlu1 %828  ;;  %v811_v19 = vpop.permute.xlu0 %810 }
 0x118   : > { %v813_v44 = vmul.f32 %v811_v19, %v808_v32  ;;  %v831_v49 = vmul.f32 %v2086_v18, %v826_v36  ;;  %v736_v19 = vsub.f32 %v735_v12, %v2169_v7  ;;  %v1763_v36 = vmov 0.0   ;;  %v635_v12 = vld [vmem:[%s634_s18] sm:$0xf] }
 0x119   : > { %619 = vmatprep.mubr.f32.mxu0 %v1763_v36  ;;  %539 = vmatprep.mubr.f32.mxu1 %v1763_v36 }
 0x11a   : > { %v814_v55 = vadd.f32 %v813_v44, %v804_v23  ;;  %v832_v61 = vadd.f32 %v831_v49, %v822_v25  ;;  %1334 = vmatmul.mubr.msk.f32.vlgmr.msra.gmra.mrb[0].mxu0 %vm466_vm1, %v460_v43 }
 0x11b   : > { %1076 = vmatprep.mubr.f32.mxu0 %v1763_v36 }
 0x11c   : > { %v685_v20 = vpop.permute.xlu1 %684  ;;  %v667_v24 = vpop.permute.xlu0 %666 }
 0x11d   : > { %v669_v38 = vmul.f32 %v667_v24, %v664_v28  ;;  %v687_v50 = vmul.f32 %v685_v20, %v682_v37  ;;  %v750_v28 = vld [vmem:[%s749_s11] sm:$0xf]  ;;  %s2367_s11 = sld [smem:[#allocation27_spill]] }
 0x11f   : > { %v670_v51 = vadd.f32 %v669_v38, %v660_v21  ;;  %v688_v62 = vadd.f32 %v687_v50, %v678_v29  ;;  %v2187_v21 = vld [vmem:[%s767_s2] sm:$0xf]  ;;  %s1766_s2 = smov 80  }
 0x120   : > { %v753_v29 = vld [vmem:[%s752_s21] sm:$0xf]  ;;  %v772_v32 = vsub.f32 %v771_v22, %v2187_v21  ;;  %s2368_s21 = sld [smem:[#allocation20_spill]] }
 0x121   : > { %v847_v31 = vpop.permute.xlu1 %846  ;;  %v703_v40 = vpop.permute.xlu0 %702  ;;  %v1085_v22 = vld [vmem:[%s2366_s6] sm:$0xff] }
 0x122   : > { %v705_v52 = vmul.f32 %v703_v40, %v700_v42  ;;  %v849_v59 = vmul.f32 %v847_v31, %v844_v48  ;;  %v754_v42 = vsub.f32 %v753_v29, %v750_v28  ;;  %v915_v48 = vld [vmem:[%s914_s28] sm:$0xf] }
 0x123   : > { %s1326_s14 = sshll.u32 %s2367_s11, 4 }
 0x124   : > { %v706_v2 = vadd.f32 %v705_v52, %v696_v33  ;;  %v850_v13 = vadd.f32 %v849_v59, %v2128_v35  ;;  %v786_v59 = vld [vmem:[%s785_s26] sm:$0xf]  ;;  %s450_s28 = scalar_lea.vmem [#allocation11], %s1326_s14  ;;  %s1098_s26 = scalar_lea.sflag [#allocation7], %s2367_s11 }
 0x125   : > { %s1114_s15 = sshll.u32 %s450_s28, 4  ;;  %s2251_s15 = int_to_ptr.vmem [resolvable:$true] %s1114_s15 }
 0x126   : > { %v865_v45 = vpop.permute.xlu1 %864  ;;  %v721_v56 = vpop.permute.xlu0 %720  ;;  %s1409_s30 = sshll.u32 %s2368_s21, 8 }
 0x127   : > { %v867_v3 = vmul.f32 %v865_v45, %v862_v53  ;;  %v723_v4 = vmul.f32 %v721_v56, %v718_v54  ;;  %v916_v56 = vsub.f32 %v915_v48, %v912_v47 }
 0x129   : > { %v868_v16 = vadd.f32 %v867_v3, %v2133_v41  ;;  %v724_v17 = vadd.f32 %v723_v4, %v714_v46 }
 0x12b   : > { %v2157_v60 = vpop.permute.xlu1 %650  ;;  %v901_v18 = vpop.permute.xlu0 %900 }
 0x12c   : > { %v815_v0 = vadd.f32 %v814_v55, %v2157_v60  ;;  %v671_v1 = vadd.f32 %v670_v51, %v2157_v60  ;;  %v833_v10 = vadd.f32 %v832_v61, %v2157_v60  ;;  %v689_v11 = vadd.f32 %v688_v62, %v2157_v60  ;;  %v463_v55 = vld [vmem:[%s2043_s27] sm:$0xff] }
 0x12d   : > { %v851_v20 = vadd.f32 %v850_v13, %v2157_v60  ;;  %v707_v26 = vadd.f32 %v706_v2, %v2157_v60  ;;  %v903_v31 = vmul.f32 %v901_v18, %v898_v14  ;;  %v869_v35 = vadd.f32 %v868_v16, %v2157_v60  ;;  %v462_v2 = vld [vmem:[%s2305_s8] sm:$0xff] }
 0x12e   : > { %v816_v8 = vmax.f32 %v815_v0, 0.0  ;;  %v672_v9 = vmax.f32 %v671_v1, 0.0  ;;  %v834_v24 = vmax.f32 %v833_v10, 0.0  ;;  %v690_v25 = vmax.f32 %v689_v11, 0.0  ;;  %v789_v1 = vld [vmem:[%s788_s10] sm:$0xf] }
 0x12f   : > { %v852_v34 = vmax.f32 %v851_v20, 0.0  ;;  %v708_v39 = vmax.f32 %v707_v26, 0.0  ;;  %v725_v40 = vadd.f32 %v724_v17, %v2157_v60  ;;  %v904_v45 = vadd.f32 %v903_v31, %v2162_v63  ;;  %v632_v11 = vld [vmem:[%s631_s4] sm:$0xf]  ;;  %s1646_s10 = scalar_lea.vmem %s2251_s15, 256 }
 0x130   : > { %954 = vrot.lane.b32.xlu0 %v816_v8, %s1761_s16  ;;  %926 = vrot.lane.b32.xlu1 %v672_v9, %s1761_s16  ;;  %v883_v15 = vpop.permute.xlu1 %882  ;;  %v775_v41 = vpop.permute.xlu0 %774  ;;  %v870_v46 = vmax.f32 %v869_v35, 0.0  ;;  %v636_v18 = vsub.f32 %v635_v12, %v632_v11  ;;  %p1647_p6 = scmp.ne.s32.totalorder %s2251_s15, %s1646_s10 }
 0x131   : > { %v885_v23 = vmul.f32 %v883_v15, %v880_v6  ;;  %v777_v49 = vmul.f32 %v775_v41, %v772_v32  ;;  %v726_v51 = vmax.f32 %v725_v40, 0.0  ;;  %v905_v0 = vadd.f32 %v904_v45, %v2157_v60 }
 0x132   : > { %p1648_p2 = pnand %p1647_p6, %p2372_p11 }
 0x133   : > { %v886_v37 = vadd.f32 %v885_v23, %v2152_v57  ;;  %v465_v57 = vcombine.high %v463_v55, %v463_v55  ;;  %v778_v61 = vadd.f32 %v777_v49, %v2187_v21  ;;  %v906_v9 = vmax.f32 %v905_v0, 0.0 }
 0x134   : > { %958 = vrot.lane.b32.xlu0 %v834_v24, %s1762_s29  ;;  %930 = vrot.lane.b32.xlu1 %v690_v25, %s1762_s29  ;;  %s2369_s29 = sld [smem:[#allocation33_spill]]  ;;  %p1649_p7 = pneg %p1648_p2 }
 0x135   : > { %v739_v33 = vpop.permute.xlu1 %738  ;;  %v887_v52 = vadd.f32 %v886_v37, %v2157_v60  ;;  %1329 = vmatprep.subr.msk.mxu1 %vm470_vm0, %v465_v57  ;;  %v779_v10 = vadd.f32 %v778_v61, %v2157_v60 }
 0x136   : > { %v741_v38 = vmul.f32 %v739_v33, %v736_v19  ;;  %1330 = vmatpush1.msk.msra.mxu1 %vm470_vm0, %v463_v55 }
 0x137   : > { %v888_v62 = vmax.f32 %v887_v52, 0.0  ;;  %1331 = vmatmul.mubr.msk.f32.vlgmr.msra.gmra.mrb[0].mxu1 %vm466_vm1, %v462_v2  ;;  %v780_v16 = vmax.f32 %v779_v10, 0.0 }
 0x138   : > { %v742_v44 = vadd.f32 %v741_v38, %v2169_v7  ;;  %962 = vrot.lane.b32.xlu0 %v852_v34, %s1764_s23  ;;  %934 = vrot.lane.b32.xlu1 %v708_v39, %s1764_s23  ;;  %v790_v7 = vsub.f32 %v789_v1, %v786_v59  ;;  %s2371_s23 = sld [smem:[#allocation35_spill]] }
 0x13a   : > { %v757_v50 = vpop.permute.xlu1 %756  ;;  %v743_v53 = vadd.f32 %v742_v44, %v2157_v60  ;;  %v1002_v55 = vld [vmem:[%s2369_s29] sm:$0xff] }
 0x13b   : > { %v759_v54 = vmul.f32 %v757_v50, %v754_v42 }
 0x13c   : > { %966 = vrot.lane.b32.xlu0 %v870_v46, %s1765_s9  ;;  %938 = vrot.lane.b32.xlu1 %v726_v51, %s1765_s9  ;;  %v744_v63 = vmax.f32 %v743_v53, 0.0  ;;  %s1769_s9 = smov [#allocation11]  }
 0x13d   : > { %v760_v58 = vadd.f32 %v759_v54, %v750_v28  ;;  %s1650_s13 = sshll.u32 %s1769_s9, 4  ;;  %s1651_s13 = int_to_ptr.vmem [resolvable:$false] %s1650_s13 }
 0x13e   : > { %s2249_s0 = scalar_lea.hbm %s2371_s23, %s1409_s30  ;;  %s1652_s22 = scalar_lea.vmem %s1651_s13, 512 }
 0x13f   : > { %v919_v3 = vpop.permute.xlu1 %918  ;;  %v761_v4 = vadd.f32 %v760_v58, %v2157_v60  ;;  %p1653_p8 = scmp.lt.s32.totalorder %s2251_s15, %s1651_s13  ;;  %p1654_p13 = scmp.lt.s32.totalorder %s1652_s22, %s1646_s10 }
 0x140   : > { %v921_v5 = vmul.f32 %v919_v3, %v916_v56  ;;  %970 = vrot.lane.b32.xlu0 %v888_v62, %s1766_s2  ;;  %942 = vrot.lane.b32.xlu1 %v744_v63, %s1766_s2 }
 0x141   : > { %v762_v6 = vmax.f32 %v761_v4, 0.0  ;;  %p1655_p10 = por %p1654_p13, %p1653_p8 }
 0x142   : > { %v922_v8 = vadd.f32 %v921_v5, %v912_v47 }
 0x143   : > { %p1656_p0 = pnand %p1655_p10, %p1649_p7 }
 0x144   : > { %974 = vrot.lane.b32.xlu0 %v906_v9, %s1767_s1  ;;  %946 = vrot.lane.b32.xlu1 %v762_v6, %s1767_s1  ;;  %v793_v13 = vpop.permute.xlu1 %792  ;;  %v923_v14 = vadd.f32 %v922_v8, %v2157_v60 }
 0x145   : > { %v795_v15 = vmul.f32 %v793_v13, %v790_v7 }
 0x146   : > { %v924_v17 = vmax.f32 %v923_v14, 0.0 }
 0x147   : > { %v796_v19 = vadd.f32 %v795_v15, %v786_v59 }
 0x148   : > { %950 = vrot.lane.b32.xlu1 %v780_v16, %s1768_s17  ;;  %978 = vrot.lane.b32.xlu0 %v924_v17, %s1768_s17 }
 0x149   : > { %v797_v20 = vadd.f32 %v796_v19, %v2157_v60  ;;  %v644_v21 = vpop.permute.xlu1 %643 }
 0x14a   : > { %v646_v23 = vmul.f32 %v644_v21, %v636_v18 }
 0x14b   : > { %v798_v36 = vmax.f32 %v797_v20, 0.0 }
 0x14c   : > { %v647_v24 = vadd.f32 %v646_v23, %v632_v11  ;;  %1088 = vperm.xlu0 %1535, %v1085_v22  }
 0x14e   : > { %v653_v25 = vadd.f32 %v2157_v60, %v647_v24 }
 0x150   : > { %v654_v37 = vmax.f32 %v653_v25, 0.0 }
 0x1a2   : > { %v955_v26 = vpop.permute.xlu0 %954  ;;  %v927_v27 = vpop.permute.xlu1 %926 }
 0x1a3   : > { %v995_v38 = vsel %vm981_vm2, %v798_v36, %v955_v26  ;;  %v982_v39 = vsel %vm981_vm2, %v654_v37, %v927_v27 }
 0x1a6   : > { %v959_v28 = vpop.permute.xlu0 %958  ;;  %v931_v29 = vpop.permute.xlu1 %930 }
 0x1a7   : > { %v996_v40 = vsel %vm983_vm3, %v995_v38, %v959_v28  ;;  %v984_v60 = vsel %vm983_vm3, %v982_v39, %v931_v29 }
 0x1aa   : > { %v963_v30 = vpop.permute.xlu0 %962  ;;  %v935_v31 = vpop.permute.xlu1 %934 }
 0x1ab   : > { %v997_v43 = vsel %vm985_vm4, %v996_v40, %v963_v30  ;;  %v986_v44 = vsel %vm985_vm4, %v984_v60, %v935_v31 }
 0x1ae   : > { %v967_v32 = vpop.permute.xlu0 %966  ;;  %v939_v33 = vpop.permute.xlu1 %938 }
 0x1af   : > { %v998_v45 = vsel %vm987_vm5, %v997_v43, %v967_v32  ;;  %v988_v46 = vsel %vm987_vm5, %v986_v44, %v939_v33 }
 0x1b2   : > { %v971_v34 = vpop.permute.xlu0 %970  ;;  %v943_v35 = vpop.permute.xlu1 %942 }
 0x1b3   : > { %v999_v47 = vsel %vm989_vm6, %v998_v45, %v971_v34  ;;  %v990_v48 = vsel %vm989_vm6, %v988_v46, %v943_v35 }
 0x1b6   : > { %v975_v41 = vpop.permute.xlu0 %974  ;;  %v947_v42 = vpop.permute.xlu1 %946 }
 0x1b7   : > { %v1000_v49 = vsel %vm991_vm7, %v999_v47, %v975_v41  ;;  %v992_v50 = vsel %vm991_vm7, %v990_v48, %v947_v42 }
 0x1ba   : > { %v979_v51 = vpop.permute.xlu0 %978  ;;  %v951_v52 = vpop.permute.xlu1 %950 }
 0x1bb   : > { %v1001_v53 = vsel %vm993_vm8, %v1000_v49, %v979_v51  ;;  %v994_v54 = vsel %vm993_vm8, %v992_v50, %v951_v52 }
 0x1bc   : > { %1398 = vmatprep.subr.msk.mxu0 %vm470_vm0, %v1001_v53 }
 0x1bd   : > { %1399 = vmatpush1.msk.msra.mxu0 %vm470_vm0, %v994_v54 }
 0x1be   : > { %1400 = vmatmul.mubr.msk.f32.vlgmr.msra.gmra.mrb[0].mxu0 %vm466_vm1, %v1002_v55 }
 0x1cb   : > { %v1089_v59 = vpop.permute.xlu0 %1088 }
 0x20a   : > { %v541_v56 = vpop.f32.mrb[0].mxu1 }
 0x20b   : > { %v543_v57 = vpop.f32.mrb[1].mxu1 }
 0x291   : > { %v1078_v58 = vpop.f32.mrb[0].mxu0 }
 0x292   : > { %v1410_v61 = vadd.f32 %v1078_v58, %v541_v56  ;;  %v1080_v62 = vpop.f32.mrb[1].mxu0 }
 0x293   : > { %v1411_v63 = vadd.f32 %v1080_v62, %v543_v57 }
 0x294   : > { %v1091_v0 = vadd.f32 %v1410_v61, %v1089_v59 }
 0x295   : > { %v1092_v1 = vadd.f32 %v1411_v63, %v1089_v59 }
 0x296   : > { %v1093_v2 = vmax.f32 %v1091_v0, 0.0 }
 0x297   : > { %v1094_v3 = vmax.f32 %v1092_v1, 0.0 }
 0x298   : > { %1095 = vst [vmem:[%s450_s28] sm:$0xff] %v1093_v2 }
 0x299   : > { %1096 = vst [vmem:[%s450_s28 + $0x8] sm:$0xff] %v1094_v3 }
 0x29a   : > { %1659 = shalt.err (!%p1656_p0)
}
 0x29b   : > { %s1660_s27 = scalar_lea.hbm %s2249_s0, 256  ;;  %s1664_s4 = scalar_lea.hbm %s2371_s23, 512 }
 0x29c   : > { %p1661_p1 = scmp.ne.s32.totalorder %s2249_s0, %s1660_s27  ;;  %p1665_p3 = scmp.lt.u32.totalorder %s2249_s0, %s2371_s23 }
 0x29d   : > { %p1666_p9 = scmp.lt.u32.totalorder %s1664_s4, %s1660_s27  ;;  %p1668_p6 = scmp.lt.u32.totalorder %s1660_s27, %s2249_s0 }
 0x29e   : > { %p1662_p12 = pnand %p1661_p1, %p2372_p11 }
 0x29f   : > { %p1667_p4 = por %p1666_p9, %p1665_p3 }
 0x2a0   : > { %p1663_p5 = pneg %p1662_p12 }
 0x2a1   : > { %p1669_p2 = por %p1668_p6, %p1667_p4 }
 0x2a3   : > { %p1670_p7 = pnand %p1669_p2, %p1663_p5 }
 0x2a5   : > { %1673 = shalt.err (!%p1670_p7)
}
 0x2a6   : > { %1422 = dma.vmem_to_hbm [thread:$0]  (%p2372_p11), %s2251_s15, 256, %s2249_s0, %s1098_s26  }
 0x2a7 PF: > { %s2373_s17 = sld [smem:[#allocation17_spill]]  ;;  %s2374_s3 = sld [smem:[#allocation23_spill]] }
 0x2a8   : > { %s2375_s16 = sld [smem:[#allocation22_spill]] }
 0x2ad   : > { %s1126_s6 = sand.u32 1, %s2373_s17   ;;  %p2376_p8 = scmp.ne.s32.totalorder %s2374_s3, 0 }
 0x2ae   : > { %p2377_p13 = scmp.ge.s32.totalorder %s2375_s16, 2  ;;  %s1127_s11 = scalar_lea.sflag [#allocation7], %s1126_s6 }
 0x2b0   : > { %p1436_p10 = pnand %p2377_p13, %p2376_p8 }
 0x2b2   : > { %1713 = dma.done.wait (!%p1436_p10), %s1127_s11, 256  }
 0x2b3   : > { %1715 = vsyncadd (!%p1436_p10), %s1127_s11, 4294967040  ;;  %s36_s1 = sadd.s32 1, %s2375_s16   ;;  %s2378_s0 = sld [smem:[#allocation18_spill]] }
 0x2b4   : > { %p33_p0 = scmp.ge.s32.totalorder %s36_s1, 4   ;;  %s2379_s18 = sld [smem:[#allocation19_spill]] }
 0x2b5   : > { %s2380_s19 = sld [smem:[#allocation26_spill]]  ;;  %s2381_s20 = sld [smem:[#allocation21_spill]] }
 0x2b6   : > { %s2382_s21 = sld [smem:[#allocation24_spill]]  ;;  %35 = sbr.rel (!%p33_p0) target bundleno = 30 (0x1e), region = 154 }
 0x2bd   :  { %1132 = vsyncpa [#allocation6], 1 }
 0x2be   :  { %1134 = vsyncpa [#allocation6 + $0x1], 1 }
 0x2bf   :  { %1135 = vsyncpa [#allocation9], 1 }
 0x2c0   :  { %1137 = vsyncpa [#allocation9 + $0x1], 1 }
 0x2c1   :  { %1138 = vsyncpa [#allocation7], 1 }
 0x2c2   :  { %1140 = vsyncpa [#allocation7 + $0x1], 1 }

</bundles_post_ra>
